<compile_context>
chip_gen: v6e
topology: v6e:2x2x1
jax: 0.10.0
libtpu: 0.0.40
codegen_flags: <defaults>
</compile_context>

<pallas_src>
import math

import jax
import jax.numpy as jnp
from jax import lax
from jax.experimental import pallas as pl
from jax.experimental.pallas import tpu as pltpu


def _round_up(n, m):
    return ((n + m - 1) // m) * m


def _cdiv(a, b):
    return (a + b - 1) // b


def _pick_batch_tile(batch, max_tile):
    """Largest divisor of `batch` <= max_tile, capped at batch//2 when batch >= 2
    so the 'parallel' grid axis has >= 2 points (keeps both v7x TensorCores busy)."""
    cap = max(1, min(max_tile, batch // 2 if batch >= 2 else batch))
    for t in range(cap, 0, -1):
        if batch % t == 0:
            return t
    return 1


def _pick_pixel_tile(hw, max_tile):
    """Pixel tile: multiple of 128 (lane-dense) when hw >= 128, else full extent."""
    if hw < 128:
        return hw
    max_tile = max(128, (max_tile // 128) * 128)
    return min(max_tile, (hw // 128) * 128)


def _vmem_bytes(shape, itemsize):
    """Padded VMEM footprint: minor dim -> 128 lanes, second-minor -> 8 sublanes."""
    s = list(shape)
    s[-1] = _round_up(s[-1], 128)
    if len(s) >= 2:
        s[-2] = _round_up(s[-2], 8)
    n = 1
    for d in s:
        n *= d
    return n * itemsize


def _vmem_capacity_bytes():
    try:
        info = pltpu.get_tpu_info()
        for attr in ("vmem_capacity_bytes", "vmem_capacity", "vmem_bytes"):
            v = getattr(info, attr, None)
            if v:
                return int(v)
    except Exception:
        pass
    return 64 * 1024 * 1024  # conservative fallback: v7x physical VMEM per TensorCore


def _make_kernel(B_TILE, P_TILE, P_CHUNK, C, F_PAD, HW, mask_tail):
    n_chunks = P_TILE // P_CHUNK
    inv_hw = 1.0 / HW

    def kernel(x_ref, wt_ref, b_ref, cw_ref, cb_ref, out_ref, acc_ref):
        # grid = (batch tiles [parallel], pixel tiles [arbitrary / reduction])
        p = pl.program_id(1)

        @pl.when(p == 0)
        def _init():
            acc_ref[...] = jnp.zeros_like(acc_ref)

        # Tiny resident operands, hoisted out of the pixel-chunk loop.
        wt = jnp.broadcast_to(wt_ref[...], (B_TILE, F_PAD, C))  # (B, F_PAD, C)
        bias = b_ref[...][None]                                 # (1, F_PAD, 1)

        def chunk_body(ci, partial):
            start = ci * P_CHUNK
            if P_CHUNK % 128 == 0:
                start = pl.multiple_of(start, 128)
            xs = x_ref[:, :, pl.ds(start, P_CHUNK)]             # (B, C, P_CHUNK) f32
            # Canonical batched matmul: (B,F_PAD,C) @ (B,C,P_CHUNK) -> (B,F_PAD,P_CHUNK)
            fp = lax.dot_general(
                wt, xs,
                dimension_numbers=(((2,), (1,)), ((0,), (0,))),
                preferred_element_type=jnp.float32)
            fp = jnp.maximum(fp + bias, 0.0)
            if mask_tail:
                pix = (p * P_TILE + start
                       + lax.broadcasted_iota(jnp.int32, (F_PAD, P_CHUNK), 1))
                fp = jnp.where((pix < HW)[None], fp, 0.0)       # mask ragged pixel tail
            # Partial global-average-pool: lane-axis pixel reduction (XLU).
            return partial + jnp.sum(fp, axis=2)                # (B, F_PAD)

        partial = lax.fori_loop(0, n_chunks, chunk_body,
                                jnp.zeros((B_TILE, F_PAD), jnp.float32),
                                unroll=True)
        acc_ref[...] += partial                                 # ONE full-tile update / step

        @pl.when(p == pl.num_programs(1) - 1)
        def _finalize():
            feat = acc_ref[...] * inv_hw                        # (B_TILE, F_PAD) pooled
            logits = jnp.dot(feat, cw_ref[...],
                             preferred_element_type=jnp.float32) + cb_ref[...]
            out_ref[0] = logits                                 # lane-dense (B_TILE, K_PAD)

    return kernel


def muti_classifier_forward(x_nchw, conv_w, conv_b, cls_w, cls_b, *,
                            max_batch_tile=4, max_pixel_tile=2048):
    """Fused forward:  GAP(ReLU(1x1conv(x))) -> nn.Linear classifier.

    x_nchw : (B, C, H, W) f32
    conv_w : (C, feature_dim)             backbone 1x1-conv weight
    conv_b : (feature_dim,)               backbone conv bias
    cls_w  : (num_classes, feature_dim)   nn.Linear weight (PyTorch layout)
    cls_b  : (num_classes,)
    Returns (B, num_classes) f32 logits.
    """
    B, C, H, W = x_nchw.shape
    Cw, F = conv_w.shape
    K, Fc = cls_w.shape
    assert Cw == C and Fc == F
    HW = H * W

    # Lane-dense padding; 256-alignment keeps the 256-wide v6e/v7x MXU full once
    # F is a realistic backbone width.
    F_PAD = _round_up(F, 256) if F >= 256 else _round_up(F, 128)
    K_PAD = _round_up(K, 128)

    B_TILE = _pick_batch_tile(B, max_batch_tile)
    P_TILE = _pick_pixel_tile(HW, max_pixel_tile)
    P_CHUNK = 128 if P_TILE % 128 == 0 else P_TILE
    nb = B // B_TILE
    n_pix = _cdiv(HW, P_TILE)
    mask_tail = (HW % P_TILE) != 0

    # x stays in native NCHW order: (B, C, HW) is a zero-copy reshape; the kernel
    # reads it exactly once as f32 (no wrapper transpose / cast HBM pass).
    x = x_nchw.reshape(B, C, HW).astype(jnp.float32)

    # Zero padding is exact: padded feature rows give relu(0 + 0) = 0 and padded
    # classifier rows/cols/bias are zero, so padded logits are 0 (sliced off).
    wt_p = jnp.zeros((F_PAD, C), jnp.float32).at[:F, :].set(conv_w.T.astype(jnp.float32))
    b_p = jnp.zeros((F_PAD, 1), jnp.float32).at[:F, 0].set(conv_b.astype(jnp.float32))
    # TODO(synk): for realistic F/K on v7x, store cw_p as bf16 (f32 accumulation)
    #             to halve the resident classifier weight; f32 kept here for
    #             bit-comparable logits.
    cw_p = jnp.zeros((F_PAD, K_PAD), jnp.float32).at[:F, :K].set(cls_w.T.astype(jnp.float32))
    cb_p = jnp.zeros((1, K_PAD), jnp.float32).at[0, :K].set(cls_b.astype(jnp.float32))

    kernel = _make_kernel(B_TILE, P_TILE, P_CHUNK, C, F_PAD, HW, mask_tail)

    grid_spec = pltpu.PrefetchScalarGridSpec(
        num_scalar_prefetch=0,
        grid=(nb, n_pix),
        in_specs=[
            # x: the only stream whose block index changes every step (pipelined).
            pl.BlockSpec((B_TILE, C, P_TILE), lambda b, p: (b, 0, p)),
            pl.BlockSpec((F_PAD, C), lambda b, p: (0, 0)),      # conv W^T (resident)
            pl.BlockSpec((F_PAD, 1), lambda b, p: (0, 0)),      # conv bias
            pl.BlockSpec((F_PAD, K_PAD), lambda b, p: (0, 0)),  # classifier W^T
            pl.BlockSpec((1, K_PAD), lambda b, p: (0, 0)),      # classifier bias
        ],
        # 3-D output so the last two block dims equal full array dims (legal for
        # any B_TILE); written once per batch tile at finalize.
        out_specs=pl.BlockSpec((1, B_TILE, K_PAD), lambda b, p: (b, 0, 0)),
        scratch_shapes=[pltpu.VMEM((B_TILE, F_PAD), jnp.float32)],  # pooled-sum acc
    )

    # VMEM budget from padded tile footprints (double-buffered pipelined buffers),
    # ~25% headroom, capped at 75% of this generation's physical VMEM.
    est = (2 * _vmem_bytes((B_TILE, C, P_TILE), 4)
           + 2 * _vmem_bytes((F_PAD, C), 4)
           + 2 * _vmem_bytes((F_PAD, 1), 4)
           + 2 * _vmem_bytes((F_PAD, K_PAD), 4)
           + 2 * _vmem_bytes((1, K_PAD), 4)
           + 2 * _vmem_bytes((1, B_TILE, K_PAD), 4)
           + _vmem_bytes((B_TILE, F_PAD), 4)
           + _vmem_bytes((B_TILE, F_PAD, P_CHUNK), 4))           # fp spill headroom
    cap = max(16 * 2**20, int(0.75 * _vmem_capacity_bytes()))
    vmem_limit = int(min(cap, max(32 * 2**20, int(1.25 * est))))

    flops = 2 * B * HW * C * F_PAD + 2 * B * HW * F_PAD + 2 * B * F_PAD * K_PAD
    bytes_accessed = (x.size * 4 + wt_p.size * 4 + b_p.size * 4
                      + cw_p.size * 4 + cb_p.size * 4 + nb * B_TILE * K_PAD * 4)

    out = pl.pallas_call(
        kernel,
        out_shape=jax.ShapeDtypeStruct((nb, B_TILE, K_PAD), jnp.float32),
        grid_spec=grid_spec,
        compiler_params=pltpu.CompilerParams(
            dimension_semantics=("parallel", "arbitrary"),
            vmem_limit_bytes=vmem_limit),
        cost_estimate=pl.CostEstimate(flops=flops, transcendentals=0,
                                      bytes_accessed=bytes_accessed),
    )(x, wt_p, b_p, cw_p, cb_p)

    return out.reshape(B, K_PAD)[:, :K]


def _reference_forward(x_nchw, conv_w, conv_b, cls_w, cls_b):
    """Pure-JAX f32 reference of the same stub backbone + Linear classifier."""
    B, C, H, W = x_nchw.shape
    x = x_nchw.reshape(B, C, H * W).astype(jnp.float32)
    pre = jnp.einsum("bcp,cf->bpf", x, conv_w.astype(jnp.float32)) + conv_b
    feat = jnp.maximum(pre, 0.0).mean(axis=1)      # global average pool -> (B, F)
    return feat @ cls_w.T + cls_b                  # nn.Linear(feature_dim, num_classes)


if __name__ == "__main__":
    def run_case(key, B, C, H, W, feature_dim, num_classes, **kw):
        ks = jax.random.split(key, 4)
        x = jax.random.normal(ks[0], (B, C, H, W), dtype=jnp.float32)
        conv_w = 0.1 * jax.random.normal(ks[1], (C, feature_dim), dtype=jnp.float32)
        conv_b = 0.1 * jax.random.normal(ks[2], (feature_dim,), dtype=jnp.float32)
        # classifier = nn.Linear(feature_dim, num_classes);
        # nn.init.xavier_uniform_(weight, 0.1); nn.init.constant_(bias, 0.0)
        bound = 0.1 * math.sqrt(6.0 / (feature_dim + num_classes))
        cls_w = jax.random.uniform(ks[3], (num_classes, feature_dim), jnp.float32,
                                   minval=-bound, maxval=bound)
        cls_b = jnp.zeros((num_classes,), jnp.float32)

        out = muti_classifier_forward(x, conv_w, conv_b, cls_w, cls_b, **kw)
        out = jax.block_until_ready(out)
        ref = _reference_forward(x, conv_w, conv_b, cls_w, cls_b)
        assert out.shape == (B, num_classes), out.shape
        err = float(jnp.abs(out - ref).max())
        assert jnp.allclose(out, ref, atol=5e-3, rtol=5e-3), err

    key = jax.random.PRNGKey(0)
    k1, k2, k3 = jax.random.split(key, 3)
    # (2,4,16,16): B_TILE=1 -> nb=2 parallel batch tiles, one 256-pixel tile (2 chunks).
    run_case(k1, 2, 4, 16, 16, 32, 8)
    # (2,4,14,14): HW=196 -> pl.cdiv pixel grid with masked ragged tail tile.
    run_case(k2, 2, 4, 14, 14, 32, 8, max_pixel_tile=128)
    # (4,4,8,8): B_TILE=2 batched-matmul path, HW=64 full-extent (<128) pixel tile.
    run_case(k3, 4, 4, 8, 8, 32, 8)
    print("KERNEL_OK")
</pallas_src>

<mosaic_0001>
module attributes {stable_mosaic.version = 11 : i64} {
  func.func @kernel(%arg0: i32, %arg1: i32, %arg2: memref<1x4x256xf32, #tpu.memory_space<vmem>>, %arg3: memref<128x4xf32, #tpu.memory_space<vmem>>, %arg4: memref<128x1xf32, #tpu.memory_space<vmem>>, %arg5: memref<128x128xf32, #tpu.memory_space<vmem>>, %arg6: memref<1x128xf32, #tpu.memory_space<vmem>>, %arg7: memref<1x1x128xf32, #tpu.memory_space<vmem>>, %arg8: memref<1x128xf32, #tpu.memory_space<vmem>>) attributes {dimension_semantics = [#tpu.dimension_semantics<parallel>, #tpu.dimension_semantics<arbitrary>], iteration_bounds = array<i64: 2, 1>, scalar_prefetch = 0 : i64, scratch_operands = 1 : i64, tpu.core_type = #tpu.core_type<tc>, window_params = [{transform_indices = @transform_0, window_bounds = array<i64: 1, 4, 256>}, {pipeline_mode = #tpu.pipeline_mode<synchronous>, transform_indices = @transform_1, window_bounds = array<i64: 128, 4>}, {pipeline_mode = #tpu.pipeline_mode<synchronous>, transform_indices = @transform_2, window_bounds = array<i64: 128, 1>}, {pipeline_mode = #tpu.pipeline_mode<synchronous>, transform_indices = @transform_3, window_bounds = array<i64: 128, 128>}, {pipeline_mode = #tpu.pipeline_mode<synchronous>, transform_indices = @transform_4, window_bounds = array<i64: 1, 128>}, {transform_indices = @transform_5, window_bounds = array<i64: 1, 1, 128>}]} {
    %c0_i32 = arith.constant 0 : i32
    %0 = arith.cmpi eq, %arg1, %c0_i32 : i32
    %1 = arith.extui %0 : i1 to i32
    %c0_i32_0 = arith.constant 0 : i32
    %2 = arith.cmpi ne, %1, %c0_i32_0 : i32
    scf.if %2 {
      %cst_22 = arith.constant 0.000000e+00 : f32
      %36 = vector.broadcast %cst_22 : f32 to vector<1x128xf32>
      %c0_23 = arith.constant 0 : index
      %c0_24 = arith.constant 0 : index
      %37 = vector.load %arg8[%c0_23, %c0_24] : memref<1x128xf32, #tpu.memory_space<vmem>>, vector<1x128xf32>
      tpu.vector_store %arg8[%c0_23, %c0_24], %36 {strides = array<i32>} : memref<1x128xf32, #tpu.memory_space<vmem>>, vector<1x128xf32>,
    } else {
    }
    %c0 = arith.constant 0 : index
    %c0_1 = arith.constant 0 : index
    %3 = vector.load %arg3[%c0, %c0_1] : memref<128x4xf32, #tpu.memory_space<vmem>>, vector<128x4xf32>
    %4 = vector.shape_cast %3 : vector<128x4xf32> to vector<1x128x4xf32>
    %c0_2 = arith.constant 0 : index
    %c0_3 = arith.constant 0 : index
    %5 = vector.load %arg4[%c0_2, %c0_3] : memref<128x1xf32, #tpu.memory_space<vmem>>, vector<128x1xf32>
    %6 = vector.shape_cast %5 : vector<128x1xf32> to vector<1x128x1xf32>
    %cst = arith.constant 0.000000e+00 : f32
    %7 = vector.broadcast %cst : f32 to vector<1x128xf32>
    %c0_i32_4 = arith.constant 0 : i32
    %c128_i32 = arith.constant 128 : i32
    %8 = arith.muli %c0_i32_4, %c128_i32 : i32
    %9 = tpu.assume_multiple %8, 128 : i32
    %c0_5 = arith.constant 0 : index
    %c0_6 = arith.constant 0 : index
    %10 = arith.index_cast %9 : i32 to index
    %11 = vector.load %arg2[%c0_5, %c0_6, %10] : memref<1x4x256xf32, #tpu.memory_space<vmem>>, vector<1x4x128xf32>
    %cst_7 = arith.constant dense<0.000000e+00> : vector<1x128x128xf32>
    %12 = tpu.matmul %4, %11, %cst_7 {dimension_numbers = #tpu.dot_dimension_numbers<[2], [1], [1], [2], [0, 0, 0, 1, 1, 2], [0], [0]>} : vector<1x128x4xf32>, vector<1x4x128xf32>, vector<1x128x128xf32> -> vector<1x128x128xf32>
    %13 = vector.broadcast %6 : vector<1x128x1xf32> to vector<1x128x128xf32>
    %14 = arith.addf %12, %13 : vector<1x128x128xf32>
    %cst_8 = arith.constant 0.000000e+00 : f32
    %15 = vector.broadcast %cst_8 : f32 to vector<1x128x128xf32>
    %16 = arith.maximumf %14, %15 : vector<1x128x128xf32>
    %cst_9 = arith.constant dense<0.000000e+00> : vector<1x128xf32>
    %17 = vector.multi_reduction <add>, %16, %cst_9 [2] : vector<1x128x128xf32> to vector<1x128xf32>
    %18 = arith.addf %7, %17 : vector<1x128xf32>
    %c1_i32 = arith.constant 1 : i32
    %c128_i32_10 = arith.constant 128 : i32
    %19 = arith.muli %c1_i32, %c128_i32_10 : i32
    %20 = tpu.assume_multiple %19, 128 : i32
    %c0_11 = arith.constant 0 : index
    %c0_12 = arith.constant 0 : index
    %21 = arith.index_cast %20 : i32 to index
    %22 = vector.load %arg2[%c0_11, %c0_12, %21] : memref<1x4x256xf32, #tpu.memory_space<vmem>>, vector<1x4x128xf32>
    %cst_13 = arith.constant dense<0.000000e+00> : vector<1x128x128xf32>
    %23 = tpu.matmul %4, %22, %cst_13 {dimension_numbers = #tpu.dot_dimension_numbers<[2], [1], [1], [2], [0, 0, 0, 1, 1, 2], [0], [0]>} : vector<1x128x4xf32>, vector<1x4x128xf32>, vector<1x128x128xf32> -> vector<1x128x128xf32>
    %24 = vector.broadcast %6 : vector<1x128x1xf32> to vector<1x128x128xf32>
    %25 = arith.addf %23, %24 : vector<1x128x128xf32>
    %cst_14 = arith.constant 0.000000e+00 : f32
    %26 = vector.broadcast %cst_14 : f32 to vector<1x128x128xf32>
    %27 = arith.maximumf %25, %26 : vector<1x128x128xf32>
    %cst_15 = arith.constant dense<0.000000e+00> : vector<1x128xf32>
    %28 = vector.multi_reduction <add>, %27, %cst_15 [2] : vector<1x128x128xf32> to vector<1x128xf32>
    %29 = arith.addf %18, %28 : vector<1x128xf32>
    %c2_i32 = arith.constant 2 : i32
    %c0_16 = arith.constant 0 : index
    %c0_17 = arith.constant 0 : index
    %30 = vector.load %arg8[%c0_16, %c0_17] : memref<1x128xf32, #tpu.memory_space<vmem>>, vector<1x128xf32>
    %31 = arith.addf %30, %29 : vector<1x128xf32>
    %c0_18 = arith.constant 0 : index
    %c0_19 = arith.constant 0 : index
    %32 = vector.load %arg8[%c0_18, %c0_19] : memref<1x128xf32, #tpu.memory_space<vmem>>, vector<1x128xf32>
    tpu.vector_store %arg8[%c0_18, %c0_19], %31 {strides = array<i32>} : memref<1x128xf32, #tpu.memory_space<vmem>>, vector<1x128xf32>,
    %c0_i32_20 = arith.constant 0 : i32
    %33 = arith.cmpi eq, %arg1, %c0_i32_20 : i32
    %34 = arith.extui %33 : i1 to i32
    %c0_i32_21 = arith.constant 0 : i32
    %35 = arith.cmpi ne, %34, %c0_i32_21 : i32
    scf.if %35 {
      %c0_22 = arith.constant 0 : index
      %c0_23 = arith.constant 0 : index
      %36 = vector.load %arg8[%c0_22, %c0_23] : memref<1x128xf32, #tpu.memory_space<vmem>>, vector<1x128xf32>
      %cst_24 = arith.constant 3.906250e-03 : f32
      %37 = vector.broadcast %cst_24 : f32 to vector<1x128xf32>
      %38 = arith.mulf %36, %37 : vector<1x128xf32>
      %c0_25 = arith.constant 0 : index
      %c0_26 = arith.constant 0 : index
      %39 = vector.load %arg5[%c0_25, %c0_26] : memref<128x128xf32, #tpu.memory_space<vmem>>, vector<128x128xf32>
      %cst_27 = arith.constant dense<0.000000e+00> : vector<1x128xf32>
      %40 = tpu.matmul %38, %39, %cst_27 {dimension_numbers = #tpu.dot_dimension_numbers<[1], [0], [0], [1], [0, 0, 1, 1], [], []>} : vector<1x128xf32>, vector<128x128xf32>, vector<1x128xf32> -> vector<1x128xf32>
      %c0_28 = arith.constant 0 : index
      %c0_29 = arith.constant 0 : index
      %41 = vector.load %arg6[%c0_28, %c0_29] : memref<1x128xf32, #tpu.memory_space<vmem>>, vector<1x128xf32>
      %42 = arith.addf %40, %41 : vector<1x128xf32>
      %c0_30 = arith.constant 0 : index
      %c0_31 = arith.constant 0 : index
      %c0_32 = arith.constant 0 : index
      %43 = vector.load %arg7[%c0_30, %c0_31, %c0_32] : memref<1x1x128xf32, #tpu.memory_space<vmem>>, vector<1x1x128xf32>
      %44 = vector.shape_cast %43 : vector<1x1x128xf32> to vector<1x128xf32>
      %45 = vector.shape_cast %42 : vector<1x128xf32> to vector<1x1x128xf32>
      tpu.vector_store %arg7[%c0_30, %c0_31, %c0_32], %45 {strides = array<i32>} : memref<1x1x128xf32, #tpu.memory_space<vmem>>, vector<1x1x128xf32>,
    } else {
    }
    return
  }
  func.func @transform_0(%arg0: i32, %arg1: i32) -> (i32, i32, i32) {
    %c0_i32 = arith.constant 0 : i32
    %c0_i32_0 = arith.constant 0 : i32
    return %arg0, %c0_i32, %arg1 : i32, i32, i32
  }
  func.func @transform_1(%arg0: i32, %arg1: i32) -> (i32, i32) {
    %c0_i32 = arith.constant 0 : i32
    %c0_i32_0 = arith.constant 0 : i32
    %c0_i32_1 = arith.constant 0 : i32
    return %c0_i32, %c0_i32_0 : i32, i32
  }
  func.func @transform_2(%arg0: i32, %arg1: i32) -> (i32, i32) {
    %c0_i32 = arith.constant 0 : i32
    %c0_i32_0 = arith.constant 0 : i32
    %c0_i32_1 = arith.constant 0 : i32
    return %c0_i32, %c0_i32_0 : i32, i32
  }
  func.func @transform_3(%arg0: i32, %arg1: i32) -> (i32, i32) {
    %c0_i32 = arith.constant 0 : i32
    %c0_i32_0 = arith.constant 0 : i32
    %c0_i32_1 = arith.constant 0 : i32
    return %c0_i32, %c0_i32_0 : i32, i32
  }
  func.func @transform_4(%arg0: i32, %arg1: i32) -> (i32, i32) {
    %c0_i32 = arith.constant 0 : i32
    %c0_i32_0 = arith.constant 0 : i32
    %c0_i32_1 = arith.constant 0 : i32
    return %c0_i32, %c0_i32_0 : i32, i32
  }
  func.func @transform_5(%arg0: i32, %arg1: i32) -> (i32, i32, i32) {
    %c0_i32 = arith.constant 0 : i32
    %c0_i32_0 = arith.constant 0 : i32
    %c0_i32_1 = arith.constant 0 : i32
    return %arg0, %c0_i32, %c0_i32_0 : i32, i32, i32
  }
}

</mosaic_0001>

<bundles_post_ra>
// kernel: tpu_custom_call.1
= control target key start
LH: loop header
LB: loop body
LE: loop exit
PB: predicated region body
PF: predicated region fallthrough
CT: control target
= control target key end

     0   :  { %10 = vsyncpa [#allocation4], 0  ;;  %s3541_s0 = inlined_call_operand.vmem [shape: f32[2,4,256], index: 0, kind: input, shape index: {}]   ;;  %s3542_s1 = inlined_call_operand.vmem [shape: f32[128,4], index: 1, kind: input, shape index: {}]   ;;  %s3543_s2 = inlined_call_operand.vmem [shape: f32[128,1], index: 2, kind: input, shape index: {}]   ;;  %s3544_s3 = inlined_call_operand.vmem [shape: f32[128,128], index: 3, kind: input, shape index: {}]   ;;  %s3545_s4 = inlined_call_operand.vmem [shape: f32[1,128], index: 4, kind: input, shape index: {}]   ;;  %s3546_s5 = inlined_call_operand.hbm [shape: f32[2,1,128], index: 5, kind: output, shape index: {}]  }
   0x1   :  { %12 = vsyncpa [#allocation4 + $0x1], 0  ;;  %s2866_s18 = smov 0   ;;  %s2868_s19 = smov 0  }
   0x2   :  { %s2870_s20 = smov 0   ;;  %s2872_s21 = smov 0  }
   0x3   :  { %s2874_s22 = smov 0   ;;  %s2876_s23 = smov 0  }
   0x4 LB: > { %s2508_s24 = sadd.s32 4294967295, %s2829_s23   ;;  %s2509_s25 = sadd.s32 4294967294, %s2829_s23   ;;  %s2829_s23 = sphi %s2876_s23, %s18_s23   ;;  %s2825_s22 = sphi %s2874_s22, %s3553_s22   ;;  %s2821_s21 = sphi %s2872_s21, %s3552_s21   ;;  %s2817_s20 = sphi %s2870_s20, %s3551_s20   ;;  %s2813_s19 = sphi %s2868_s19, %s3550_s19   ;;  %s2809_s18 = sphi %s2866_s18, %s3549_s18  }
   0x5   : > { %s30_s26 = sadd.s32 1, %s2825_s22  ;;  %s149_s27 = sadd.s32 1, %s2817_s20 }
   0x6   : > { %p32_p0 = scmp.ge.s32.totalorder %s30_s26, 2  ;;  %p159_p1 = scmp.ne.s32.totalorder %s2817_s20, %s2813_s19 }
   0x7   : > { %p160_p2 = scmp.eq.s32.totalorder %s2508_s24, 1  ;;  %p165_p3 = scmp.ne.s32.totalorder %s2813_s19, %s2809_s18 }
   0x8   : > { %s3555_s26 = smov (%p32_p0, %s30_s26), 0  ;;  %p166_p5 = scmp.eq.s32.totalorder %s2509_s25, 1 }
   0x9   : > { %p2906_p4 = por %p160_p2, %p159_p1  ;;  %s146_s29 = ssub.s32 %s2825_s22, %s3555_s26 }
   0xa   : > { %p2512_p6 = scmp.ge.s32.totalorder %s2829_s23, 1  ;;  %p147_p7 = scmp.eq.s32.totalorder %s146_s29, 0 }
   0xb   : > { %p2913_p8 = por %p166_p5, %p165_p3  ;;  %p209_p9 = scmp.lt.s32.totalorder %s2829_s23, 3 }
   0xc   : > { %s2919_s6 = scalar_select %p147_p7, %s2817_s20, %s149_s27  }
   0xd   : > { %p210_p10 = pnand %p2512_p6, %p209_p9 }
   0xe   : > { %p241_p11 = scmp.lt.s32.totalorder (!%p210_p10), %s2821_s21, 1  ;;  %s238_s24 = sand.u32 (!%p210_p10), 1, %s2813_s19  }
   0xf   : > { %213 = sbr.rel (%p210_p10) target bundleno = 813 (0x32d), region = 40  ;;  %s2550_s29 = sshll.u32 (!%p210_p10), %s2821_s21, 4 }
  0x10   : > { %s239_s7 = scalar_lea.vmem (!%p210_p10), [#allocation3], %s238_s24  ;;  %s3501_s11 = scalar_lea.hbm (!%p210_p10), %s3546_s5, %s2550_s29 }
  0x11   : > { %s2439_s8 = sshll.u32 (!%p210_p10), %s239_s7, 4  ;;  %s2427_s12 = scalar_lea.sflag (!%p210_p10), [#allocation4], %s238_s24  ;;  %s2440_s8 = int_to_ptr.vmem [resolvable:$true] %s2439_s8 }
  0x12   : > { %s2835_s14 = smov (!%p210_p10), [#allocation3]  }
  0x14   : > { %v255_v0 = vld [vmem:[%s3542_s1] sm:$0xff]  ;;  %vm368_vm0 = vcmask 31744   ;;  %s242_s9 = scalar_select %p241_p11, %s2821_s21, 1  ;;  %v2831_v1 = vmov 0   ;;  %vm417_vm1 = vcmask 1043456   ;;  %v256_v5 = vld [vmem:[%s3542_s1 + $0x8] sm:$0xff] }
  0x15   : > { %2607 = vmatprep.mubr.msk.f32.mxu0 %vm368_vm0, %v255_v0  ;;  %2633 = vmatprep.mubr.msk.f32.mxu1 %vm368_vm0, %v255_v0  ;;  %v271_v2 = vld [vmem:[%s3543_s2] sm:$0xff]  ;;  %v257_v6 = vld [vmem:[%s3542_s1 + $0x10] sm:$0xff]  ;;  %v272_v7 = vld [vmem:[%s3543_s2 + $0x8] sm:$0xff]  ;;  %vm2834_vm2 = vmmov 0   ;;  %vm2216_vm3 = vcmask 130112   ;;  %vm2223_vm4 = vcmask 195712  }
  0x16   : > { %2751 = vset.pattern.permute.xlu0 %v2831_v1  ;;  %2752 = vset.pattern.permute.xlu1 %v2831_v1  ;;  %s2553_s10 = sshll.u32 %s242_s9, 3  ;;  %v273_v8 = vld [vmem:[%s3543_s2 + $0x10] sm:$0xff]  ;;  %v258_v9 = vld [vmem:[%s3542_s1 + $0x18] sm:$0xff]  ;;  %v259_v10 = vld [vmem:[%s3542_s1 + $0x20] sm:$0xff]  ;;  %vm2230_vm5 = vcmask 261312   ;;  %vm2237_vm6 = vcmask 326912  }
  0x17   : > { %s248_s13 = scalar_lea.vmem %s3541_s0, %s2553_s10  ;;  %290 = vperm.xlu0 %2751, %v271_v2   ;;  %300 = vperm.xlu1 %2752, %v273_v8   ;;  %v275_v11 = vld [vmem:[%s3543_s2 + $0x20] sm:$0xff]  ;;  %v274_v12 = vld [vmem:[%s3543_s2 + $0x18] sm:$0xff]  ;;  %v260_v13 = vld [vmem:[%s3542_s1 + $0x28] sm:$0xff]  ;;  %vm2244_vm7 = vcmask 392512   ;;  %vm2251_vm8 = vcmask 458112   ;;  %vm2258_vm9 = vcmask 523712  }
  0x18   : > { %v287_v3 = vld [vmem:[%s248_s13] sm:$0xf]  ;;  %v2532_v4 = vld [vmem:[%s248_s13 + $0x4] sm:$0xf]  ;;  %v261_v14 = vld [vmem:[%s3542_s1 + $0x30] sm:$0xff]  ;;  %vm2265_vm10 = vcmask 589312  }
  0x19   : > { %2605 = vmatprep.subr.msk.mxu0 %vm417_vm1, %v287_v3  ;;  %2631 = vmatprep.subr.msk.mxu1 %vm417_vm1, %v2532_v4  ;;  %v277_v15 = vld [vmem:[%s3543_s2 + $0x30] sm:$0xff]  ;;  %v276_v16 = vld [vmem:[%s3543_s2 + $0x28] sm:$0xff]  ;;  %v262_v17 = vld [vmem:[%s3542_s1 + $0x38] sm:$0xff]  ;;  %vm2272_vm11 = vcmask 654912   ;;  %vm2279_vm12 = vcmask 720512   ;;  %vm2286_vm13 = vcmask 786112  }
  0x1a   : > { %2606 = vmatpush3.msk.msra.mxu0 %vm417_vm1, %v287_v3  ;;  %2632 = vmatpush3.msk.msra.mxu1 %vm417_vm1, %v2532_v4  ;;  %v263_v18 = vld [vmem:[%s3542_s1 + $0x40] sm:$0xff]  ;;  %v278_v20 = vld [vmem:[%s3543_s2 + $0x38] sm:$0xff]  ;;  %v264_v21 = vld [vmem:[%s3542_s1 + $0x48] sm:$0xff]  ;;  %vm2293_vm14 = vcmask 851712   ;;  %vm2300_vm15 = vcmask 917312   ;;  %vm2314_vm1 = vcmask 1048512  }
  0x1b   : > { %2608 = vmatmul.mubr.msk.f32.vlgmr.msra.gmra.mxu0 %vm368_vm0, %v256_v5  ;;  %2634 = vmatmul.mubr.msk.f32.vlgmr.msra.gmra.mxu1 %vm368_vm0, %v256_v5  ;;  %v279_v19 = vld [vmem:[%s3543_s2 + $0x40] sm:$0xff]  ;;  %v265_v22 = vld [vmem:[%s3542_s1 + $0x50] sm:$0xff]  ;;  %v280_v24 = vld [vmem:[%s3543_s2 + $0x48] sm:$0xff]  ;;  %s2753_s13 = scalar_lea.vmem %s2440_s8, 16  ;;  %s2757_s21 = sshll.u32 %s2835_s14, 4  ;;  %s2758_s21 = int_to_ptr.vmem [resolvable:$false] %s2757_s21 }
  0x1c   : > { %2610 = vmatprep.mubr.msk.f32.mxu0 %vm368_vm0, %v257_v6  ;;  %2636 = vmatprep.mubr.msk.f32.mxu1 %vm368_vm0, %v257_v6  ;;  %v281_v23 = vld [vmem:[%s3543_s2 + $0x50] sm:$0xff]  ;;  %v266_v25 = vld [vmem:[%s3542_s1 + $0x58] sm:$0xff]  ;;  %v267_v26 = vld [vmem:[%s3542_s1 + $0x60] sm:$0xff]  ;;  %p2754_p12 = scmp.ne.s32.totalorder %s2440_s8, %s2753_s13  ;;  %s2759_s15 = scalar_lea.vmem %s2758_s21, 32 }
  0x1d   : > { %295 = vperm.xlu0 %2751, %v272_v7   ;;  %305 = vperm.xlu1 %2752, %v274_v12   ;;  %v283_v27 = vld [vmem:[%s3543_s2 + $0x60] sm:$0xff]  ;;  %v282_v28 = vld [vmem:[%s3543_s2 + $0x58] sm:$0xff]  ;;  %v268_v29 = vld [vmem:[%s3542_s1 + $0x68] sm:$0xff]  ;;  %p2760_p1 = scmp.lt.s32.totalorder %s2440_s8, %s2758_s21  ;;  %p2761_p2 = scmp.lt.s32.totalorder %s2759_s15, %s2753_s13 }
  0x1e   : > { %v269_v30 = vld [vmem:[%s3542_s1 + $0x70] sm:$0xff]  ;;  %v284_v32 = vld [vmem:[%s3543_s2 + $0x68] sm:$0xff]  ;;  %v270_v33 = vld [vmem:[%s3542_s1 + $0x78] sm:$0xff]  ;;  %p2755_p13 = pnand %p2754_p12, %p2906_p4 }
  0x1f   : > { %2611 = vmatmul.mubr.msk.f32.gmra.mxu0 %vm368_vm0, %v258_v9  ;;  %2637 = vmatmul.mubr.msk.f32.gmra.mxu1 %vm368_vm0, %v258_v9  ;;  %v285_v31 = vld [vmem:[%s3543_s2 + $0x70] sm:$0xff]  ;;  %v286_v34 = vld [vmem:[%s3543_s2 + $0x78] sm:$0xff]  ;;  %p2762_p3 = por %p2761_p2, %p2760_p1 }
  0x20   : > { %2613 = vmatprep.mubr.msk.f32.mxu0 %vm368_vm0, %v259_v10  ;;  %2639 = vmatprep.mubr.msk.f32.mxu1 %vm368_vm0, %v259_v10  ;;  %p2756_p0 = pneg %p2755_p13 }
  0x21   : > { %310 = vperm.xlu0 %2751, %v275_v11   ;;  %315 = vperm.xlu1 %2752, %v276_v16  }
  0x22   : > { %p2763_p5 = pnand %p2762_p3, %p2756_p0 }
  0x23   : > { %2614 = vmatmul.mubr.msk.f32.gmra.mxu0 %vm368_vm0, %v260_v13  ;;  %2640 = vmatmul.mubr.msk.f32.gmra.mxu1 %vm368_vm0, %v260_v13 }
  0x24   : > { %2616 = vmatprep.mubr.msk.f32.mxu0 %vm368_vm0, %v261_v14  ;;  %2642 = vmatprep.mubr.msk.f32.mxu1 %vm368_vm0, %v261_v14 }
  0x25   : > { %320 = vperm.xlu0 %2751, %v277_v15   ;;  %325 = vperm.xlu1 %2752, %v278_v20  }
  0x27   : > { %2617 = vmatmul.mubr.msk.f32.gmra.mxu0 %vm368_vm0, %v262_v17  ;;  %2643 = vmatmul.mubr.msk.f32.gmra.mxu1 %vm368_vm0, %v262_v17 }
  0x28   : > { %2619 = vmatprep.mubr.msk.f32.mxu0 %vm368_vm0, %v263_v18  ;;  %2645 = vmatprep.mubr.msk.f32.mxu1 %vm368_vm0, %v263_v18 }
  0x29   : > { %330 = vperm.xlu0 %2751, %v279_v19   ;;  %335 = vperm.xlu1 %2752, %v280_v24  }
  0x2b   : > { %2620 = vmatmul.mubr.msk.f32.gmra.mxu0 %vm368_vm0, %v264_v21  ;;  %2646 = vmatmul.mubr.msk.f32.gmra.mxu1 %vm368_vm0, %v264_v21 }
  0x2c   : > { %2622 = vmatprep.mubr.msk.f32.mxu0 %vm368_vm0, %v265_v22  ;;  %2648 = vmatprep.mubr.msk.f32.mxu1 %vm368_vm0, %v265_v22 }
  0x2d   : > { %340 = vperm.xlu0 %2751, %v281_v23   ;;  %345 = vperm.xlu1 %2752, %v282_v28  }
  0x2f   : > { %2623 = vmatmul.mubr.msk.f32.gmra.mxu0 %vm368_vm0, %v266_v25  ;;  %2649 = vmatmul.mubr.msk.f32.gmra.mxu1 %vm368_vm0, %v266_v25 }
  0x30   : > { %2625 = vmatprep.mubr.msk.f32.mxu0 %vm368_vm0, %v267_v26  ;;  %2651 = vmatprep.mubr.msk.f32.mxu1 %vm368_vm0, %v267_v26 }
  0x31   : > { %350 = vperm.xlu0 %2751, %v283_v27   ;;  %355 = vperm.xlu1 %2752, %v284_v32  }
  0x33   : > { %2626 = vmatmul.mubr.msk.f32.gmra.mxu0 %vm368_vm0, %v268_v29  ;;  %2652 = vmatmul.mubr.msk.f32.gmra.mxu1 %vm368_vm0, %v268_v29 }
  0x34   : > { %2628 = vmatprep.mubr.msk.f32.mxu0 %vm368_vm0, %v269_v30  ;;  %2654 = vmatprep.mubr.msk.f32.mxu1 %vm368_vm0, %v269_v30 }
  0x35   : > { %360 = vperm.xlu0 %2751, %v285_v31   ;;  %365 = vperm.xlu1 %2752, %v286_v34  }
  0x37   : > { %2629 = vmatmul.mubr.msk.f32.gmra.mxu0 %vm368_vm0, %v270_v33  ;;  %2655 = vmatmul.mubr.msk.f32.gmra.mxu1 %vm368_vm0, %v270_v33  ;;  %vm2307_vm0 = vcmask 982912  }
  0x92   : > { %v291_v35 = vpop.permute.xlu0 %290  ;;  %v301_v36 = vpop.permute.xlu1 %300 }
  0x98   : > { %v296_v37 = vpop.permute.xlu0 %295  ;;  %v306_v44 = vpop.permute.xlu1 %305 }
  0x9c   : > { %v316_v59 = vpop.permute.xlu1 %315  ;;  %v311_v2 = vpop.permute.xlu0 %310 }
  0xa0   : > { %v326_v9 = vpop.permute.xlu1 %325  ;;  %v321_v16 = vpop.permute.xlu0 %320 }
  0xa4   : > { %v336_v23 = vpop.permute.xlu1 %335  ;;  %v331_v30 = vpop.permute.xlu0 %330 }
  0xdb   : > { %v2609_v38 = vpop.f32.mrf.mxu0  ;;  %v2635_v39 = vpop.f32.mrf.mxu1 }
  0xdc   : > { %v493_v40 = vadd.f32 %v2609_v38, %v296_v37  ;;  %v707_v41 = vadd.f32 %v2635_v39, %v296_v37  ;;  %v346_v37 = vpop.permute.xlu1 %345 }
  0xdd   : > { %v487_v42 = vpop.f32.mrf.mxu0  ;;  %v701_v43 = vpop.f32.mrf.mxu1 }
  0xde   : > { %v567_v45 = vmax.f32 %v493_v40, 0.0  ;;  %v781_v46 = vmax.f32 %v707_v41, 0.0  ;;  %v488_v47 = vadd.f32 %v487_v42, %v291_v35  ;;  %v702_v53 = vadd.f32 %v701_v43, %v291_v35 }
  0xdf   : > { %v2612_v48 = vpop.f32.mrf.mxu0  ;;  %v2638_v49 = vpop.f32.mrf.mxu1 }
  0xe0   : > { %v503_v50 = vadd.f32 %v2612_v48, %v306_v44  ;;  %798 = vadd.xlane.f32.xlu0 %v781_v46  ;;  %584 = vadd.xlane.f32.xlu1 %v567_v45  ;;  %v566_v52 = vmax.f32 %v488_v47, 0.0  ;;  %v780_v61 = vmax.f32 %v702_v53, 0.0  ;;  %v717_v62 = vadd.f32 %v2638_v49, %v306_v44  ;;  %v341_v44 = vpop.permute.xlu0 %340 }
  0xe1   : > { %v497_v51 = vpop.f32.mrf.mxu0  ;;  %v711_v56 = vpop.f32.mrf.mxu1 }
  0xe2   : > { %v569_v54 = vmax.f32 %v503_v50, 0.0  ;;  %v498_v55 = vadd.f32 %v497_v51, %v301_v36  ;;  %v783_v3 = vmax.f32 %v717_v62, 0.0  ;;  %v712_v4 = vadd.f32 %v711_v56, %v301_v36  ;;  %v356_v51 = vpop.permute.xlu1 %355 }
  0xe3   : > { %v2615_v57 = vpop.f32.mrf.mxu0  ;;  %v2641_v0 = vpop.f32.mrf.mxu1 }
  0xe4   : > { %v568_v58 = vmax.f32 %v498_v55, 0.0  ;;  %588 = vadd.xlane.f32.xlu1 %v569_v54  ;;  %582 = vadd.xlane.f32.xlu0 %v566_v52  ;;  %v513_v63 = vadd.f32 %v2615_v57, %v316_v59  ;;  %v782_v10 = vmax.f32 %v712_v4, 0.0  ;;  %v727_v11 = vadd.f32 %v2641_v0, %v316_v59  ;;  %v351_v52 = vpop.permute.xlu0 %350 }
  0xe5   : > { %v507_v60 = vpop.f32.mrf.mxu0  ;;  %v721_v7 = vpop.f32.mrf.mxu1 }
  0xe6   : > { %v571_v5 = vmax.f32 %v513_v63, 0.0  ;;  %v508_v6 = vadd.f32 %v507_v60, %v311_v2  ;;  %v785_v17 = vmax.f32 %v727_v11, 0.0  ;;  %v722_v18 = vadd.f32 %v721_v7, %v311_v2  ;;  %v366_v7 = vpop.permute.xlu1 %365 }
  0xe7   : > { %v2618_v1 = vpop.f32.mrf.mxu0  ;;  %v2644_v14 = vpop.f32.mrf.mxu1 }
  0xe8   : > { %586 = vadd.xlane.f32.xlu1 %v568_v58  ;;  %796 = vadd.xlane.f32.xlu0 %v780_v61  ;;  %v570_v12 = vmax.f32 %v508_v6, 0.0  ;;  %v523_v13 = vadd.f32 %v2618_v1, %v326_v9  ;;  %v784_v24 = vmax.f32 %v722_v18, 0.0  ;;  %v737_v25 = vadd.f32 %v2644_v14, %v326_v9  ;;  %v361_v1 = vpop.permute.xlu0 %360 }
  0xe9   : > { %v517_v8 = vpop.f32.mrf.mxu0  ;;  %v731_v21 = vpop.f32.mrf.mxu1 }
  0xea   : > { %v573_v19 = vmax.f32 %v523_v13, 0.0  ;;  %v518_v20 = vadd.f32 %v517_v8, %v321_v16  ;;  %v787_v31 = vmax.f32 %v737_v25, 0.0  ;;  %v732_v32 = vadd.f32 %v731_v21, %v321_v16 }
  0xeb   : > { %v2621_v15 = vpop.f32.mrf.mxu0  ;;  %v2647_v28 = vpop.f32.mrf.mxu1 }
  0xec   : > { %592 = vadd.xlane.f32.xlu1 %v571_v5  ;;  %802 = vadd.xlane.f32.xlu0 %v783_v3  ;;  %v572_v26 = vmax.f32 %v518_v20, 0.0  ;;  %v533_v27 = vadd.f32 %v2621_v15, %v336_v23  ;;  %v786_v38 = vmax.f32 %v732_v32, 0.0  ;;  %v747_v39 = vadd.f32 %v2647_v28, %v336_v23 }
  0xed   : > { %v527_v22 = vpop.f32.mrf.mxu0  ;;  %v741_v35 = vpop.f32.mrf.mxu1  ;;  %v2832_v20 = vmov 1966171168  }
  0xee   : > { %v575_v33 = vmax.f32 %v533_v27, 0.0  ;;  %v528_v34 = vadd.f32 %v527_v22, %v331_v30  ;;  %v789_v45 = vmax.f32 %v747_v39, 0.0  ;;  %v742_v46 = vadd.f32 %v741_v35, %v331_v30 }
  0xef   : > { %v2624_v29 = vpop.f32.mrf.mxu0  ;;  %v2650_v42 = vpop.f32.mrf.mxu1  ;;  %v1378_v21 = vunpack.c.l.s4 %v2832_v20 }
  0xf0   : > { %590 = vadd.xlane.f32.xlu1 %v570_v12  ;;  %800 = vadd.xlane.f32.xlu0 %v782_v10  ;;  %v574_v40 = vmax.f32 %v528_v34, 0.0  ;;  %v543_v41 = vadd.f32 %v2624_v29, %v346_v37  ;;  %v788_v53 = vmax.f32 %v742_v46, 0.0  ;;  %v757_v54 = vadd.f32 %v2650_v42, %v346_v37 }
  0xf1   : > { %v537_v36 = vpop.f32.mrf.mxu0  ;;  %v751_v49 = vpop.f32.mrf.mxu1  ;;  %v1379_v23 = vunpack.c.0.s8 %v1378_v21 }
  0xf2   : > { %v577_v47 = vmax.f32 %v543_v41, 0.0  ;;  %v538_v48 = vadd.f32 %v537_v36, %v341_v44  ;;  %v791_v59 = vmax.f32 %v757_v54, 0.0  ;;  %v752_v60 = vadd.f32 %v751_v49, %v341_v44 }
  0xf3   : > { %v2627_v43 = vpop.f32.mrf.mxu0  ;;  %v2653_v57 = vpop.f32.mrf.mxu1 }
  0xf4   : > { %596 = vadd.xlane.f32.xlu1 %v573_v19  ;;  %806 = vadd.xlane.f32.xlu0 %v785_v17  ;;  %v576_v55 = vmax.f32 %v538_v48, 0.0  ;;  %v553_v56 = vadd.f32 %v2627_v43, %v356_v51  ;;  %v790_v2 = vmax.f32 %v752_v60, 0.0  ;;  %v767_v3 = vadd.f32 %v2653_v57, %v356_v51 }
  0xf5   : > { %v547_v50 = vpop.f32.mrf.mxu0  ;;  %v761_v63 = vpop.f32.mrf.mxu1  ;;  %v861_v19 = vlaneseq }
  0xf6   : > { %v579_v61 = vmax.f32 %v553_v56, 0.0  ;;  %v548_v62 = vadd.f32 %v547_v50, %v351_v52  ;;  %v793_v8 = vmax.f32 %v767_v3, 0.0  ;;  %v762_v9 = vadd.f32 %v761_v63, %v351_v52 }
  0xf7   : > { %v2630_v58 = vpop.f32.mrf.mxu0  ;;  %v2656_v6 = vpop.f32.mrf.mxu1  ;;  %v3055_v22 = vshrl.u32 %v861_v19, 7 }
  0xf8   : > { %594 = vadd.xlane.f32.xlu1 %v572_v26  ;;  %804 = vadd.xlane.f32.xlu0 %v784_v24  ;;  %v578_v4 = vmax.f32 %v548_v62, 0.0  ;;  %v563_v10 = vadd.f32 %v2630_v58, %v366_v7  ;;  %v792_v13 = vmax.f32 %v762_v9, 0.0  ;;  %v777_v16 = vadd.f32 %v2656_v6, %v366_v7 }
  0xf9   : > { %v557_v0 = vpop.f32.mrf.mxu0  ;;  %v771_v12 = vpop.f32.mrf.mxu1  ;;  %v3058_v24 = vsub.s32 0, %v3055_v22  ;;  %v3061_v25 = vsub.s32 1, %v3055_v22  ;;  %v3064_v26 = vsub.s32 2, %v3055_v22  ;;  %v3067_v27 = vsub.s32 3, %v3055_v22 }
  0xfa   : > { %v558_v5 = vadd.f32 %v557_v0, %v361_v1  ;;  %v581_v14 = vmax.f32 %v563_v10, 0.0  ;;  %v772_v15 = vadd.f32 %v771_v12, %v361_v1  ;;  %v795_v18 = vmax.f32 %v777_v16, 0.0 }
  0xfb   : > { %v3070_v30 = vsub.s32 4, %v3055_v22  ;;  %v3076_v32 = vsub.s32 6, %v3055_v22  ;;  %v3082_v35 = vsub.s32 %v1379_v23, %v3055_v22 }
  0xfc   : > { %600 = vadd.xlane.f32.xlu1 %v575_v33  ;;  %810 = vadd.xlane.f32.xlu0 %v787_v31  ;;  %v580_v11 = vmax.f32 %v558_v5, 0.0  ;;  %v794_v17 = vmax.f32 %v772_v15, 0.0  ;;  %v3073_v31 = vsub.s32 5, %v3055_v22  ;;  %v3079_v33 = vsub.s32 7, %v3055_v22 }
 0x100   : > { %598 = vadd.xlane.f32.xlu1 %v574_v40  ;;  %808 = vadd.xlane.f32.xlu0 %v786_v38 }
 0x104   : > { %604 = vadd.xlane.f32.xlu1 %v577_v47  ;;  %814 = vadd.xlane.f32.xlu0 %v789_v45 }
 0x108   : > { %602 = vadd.xlane.f32.xlu1 %v576_v55  ;;  %812 = vadd.xlane.f32.xlu0 %v788_v53 }
 0x10c   : > { %608 = vadd.xlane.f32.xlu1 %v579_v61  ;;  %818 = vadd.xlane.f32.xlu0 %v791_v59 }
 0x110   : > { %606 = vadd.xlane.f32.xlu1 %v578_v4  ;;  %816 = vadd.xlane.f32.xlu0 %v790_v2 }
 0x114   : > { %610 = vadd.xlane.f32.xlu1 %v580_v11  ;;  %822 = vadd.xlane.f32.xlu0 %v793_v8 }
 0x118   : > { %612 = vadd.xlane.f32.xlu1 %v581_v14  ;;  %820 = vadd.xlane.f32.xlu0 %v792_v13 }
 0x11c   : > { %824 = vadd.xlane.f32.xlu0 %v794_v17 }
 0x120   : > { %826 = vadd.xlane.f32.xlu0 %v795_v18 }
 0x169   : > { %v799_v28 = vpop.xlane.xlu0 %798  ;;  %v585_v29 = vpop.xlane.xlu1 %584 }
 0x16a   : > { %v829_v34 = vadd.f32 %v799_v28, %v585_v29 }
 0x16c   : > { %v896_v36 = vrot.slane %v829_v34, %v3058_v24  ;;  %v900_v37 = vrot.slane %v829_v34, %v3061_v25  ;;  %v904_v38 = vrot.slane %v829_v34, %v3064_v26  ;;  %v908_v39 = vrot.slane %v829_v34, %v3067_v27 }
 0x16d   : > { %v589_v40 = vpop.xlane.xlu1 %588  ;;  %v583_v41 = vpop.xlane.xlu0 %582  ;;  %v912_v42 = vrot.slane %v829_v34, %v3070_v30  ;;  %v916_v43 = vrot.slane %v829_v34, %v3073_v31  ;;  %v920_v44 = vrot.slane %v829_v34, %v3076_v32  ;;  %v924_v45 = vrot.slane %v829_v34, %v3079_v33 }
 0x16e   : > { %v1422_v46 = vcombine.low %v896_v36, %v900_v37  ;;  %v1423_v47 = vcombine.low %v904_v38, %v908_v39 }
 0x16f   : > { %v1424_v48 = vcombine.low %v912_v42, %v916_v43  ;;  %v1425_v49 = vcombine.low %v920_v44, %v924_v45 }
 0x170   : > { %v1432_v50 = vrot.slane %v1422_v46, %v3082_v35  ;;  %v1439_v51 = vrot.slane %v1423_v47, %v3082_v35 }
 0x171   : > { %v587_v52 = vpop.xlane.xlu1 %586  ;;  %v797_v53 = vpop.xlane.xlu0 %796  ;;  %v1446_v54 = vrot.slane %v1424_v48, %v3082_v35  ;;  %v1453_v55 = vrot.slane %v1425_v49, %v3082_v35 }
 0x172   : > { %v828_v56 = vadd.f32 %v797_v53, %v583_v41  ;;  %v1454_v57 = vcombine.low %v1432_v50, %v1439_v51 }
 0x173   : > { %v1455_v58 = vcombine.low %v1446_v54, %v1453_v55 }
 0x174   : > { %v1462_v59 = vrot.slane %v1454_v57, %v3082_v35  ;;  %v864_v60 = vrot.slane %v828_v56, %v3058_v24  ;;  %v868_v61 = vrot.slane %v828_v56, %v3061_v25  ;;  %v872_v62 = vrot.slane %v828_v56, %v3064_v26 }
 0x175   : > { %v593_v63 = vpop.xlane.xlu1 %592  ;;  %v803_v0 = vpop.xlane.xlu0 %802  ;;  %v1469_v1 = vrot.slane %v1455_v58, %v3082_v35  ;;  %v876_v2 = vrot.slane %v828_v56, %v3067_v27  ;;  %v880_v3 = vrot.slane %v828_v56, %v3070_v30  ;;  %v884_v4 = vrot.slane %v828_v56, %v3073_v31 }
 0x176   : > { %v831_v5 = vadd.f32 %v803_v0, %v589_v40  ;;  %v888_v6 = vrot.slane %v828_v56, %v3076_v32  ;;  %v892_v7 = vrot.slane %v828_v56, %v3079_v33  ;;  %v1373_v8 = vcombine.low %v864_v60, %v868_v61 }
 0x177   : > { %v1470_v9 = vcombine.low %v1462_v59, %v1469_v1  ;;  %v1374_v10 = vcombine.low %v872_v62, %v876_v2  ;;  %v1375_v11 = vcombine.low %v880_v3, %v884_v4 }
 0x178   : > { %v1376_v12 = vcombine.low %v888_v6, %v892_v7  ;;  %v1383_v13 = vrot.slane %v1373_v8, %v3082_v35  ;;  %v960_v14 = vrot.slane %v831_v5, %v3058_v24  ;;  %v964_v15 = vrot.slane %v831_v5, %v3061_v25 }
 0x179   : > { %2161 = vperm.xlu0 %2751, %v1470_v9   ;;  %v591_v16 = vpop.xlane.xlu1 %590  ;;  %v801_v17 = vpop.xlane.xlu0 %800  ;;  %v1390_v18 = vrot.slane %v1374_v10, %v3082_v35  ;;  %v1397_v20 = vrot.slane %v1375_v11, %v3082_v35  ;;  %v968_v21 = vrot.slane %v831_v5, %v3064_v26  ;;  %v972_v23 = vrot.slane %v831_v5, %v3067_v27 }
 0x17a   : > { %v830_v28 = vadd.f32 %v801_v17, %v587_v52  ;;  %v1404_v29 = vrot.slane %v1376_v12, %v3082_v35  ;;  %v976_v34 = vrot.slane %v831_v5, %v3070_v30  ;;  %v980_v36 = vrot.slane %v831_v5, %v3073_v31 }
 0x17b   : > { %v1405_v37 = vcombine.low %v1383_v13, %v1390_v18  ;;  %v984_v38 = vrot.slane %v831_v5, %v3076_v32  ;;  %v988_v39 = vrot.slane %v831_v5, %v3079_v33  ;;  %v1520_v40 = vcombine.low %v960_v14, %v964_v15 }
 0x17c   : > { %v1406_v41 = vcombine.low %v1397_v20, %v1404_v29  ;;  %v1521_v42 = vcombine.low %v968_v21, %v972_v23  ;;  %v1522_v43 = vcombine.low %v976_v34, %v980_v36  ;;  %v928_v44 = vrot.slane %v830_v28, %v3058_v24 }
 0x17d   : > { %v597_v45 = vpop.xlane.xlu1 %596  ;;  %v807_v46 = vpop.xlane.xlu0 %806  ;;  %v1413_v47 = vrot.slane %v1405_v37, %v3082_v35  ;;  %v1523_v48 = vcombine.low %v984_v38, %v988_v39  ;;  %v1530_v49 = vrot.slane %v1520_v40, %v3082_v35  ;;  %v932_v50 = vrot.slane %v830_v28, %v3061_v25 }
 0x17e   : > { %v833_v51 = vadd.f32 %v807_v46, %v593_v63  ;;  %v1420_v52 = vrot.slane %v1406_v41, %v3082_v35  ;;  %v1537_v53 = vrot.slane %v1521_v42, %v3082_v35  ;;  %v1544_v54 = vrot.slane %v1522_v43, %v3082_v35 }
 0x17f   : > { %v1551_v55 = vrot.slane %v1523_v48, %v3082_v35  ;;  %v936_v56 = vrot.slane %v830_v28, %v3064_v26  ;;  %v940_v57 = vrot.slane %v830_v28, %v3067_v27  ;;  %v944_v58 = vrot.slane %v830_v28, %v3070_v30 }
 0x180   : > { %v1421_v59 = vcombine.low %v1413_v47, %v1420_v52  ;;  %v1552_v60 = vcombine.low %v1530_v49, %v1537_v53  ;;  %v948_v61 = vrot.slane %v830_v28, %v3073_v31  ;;  %v952_v62 = vrot.slane %v830_v28, %v3076_v32 }
 0x181   : > { %v595_v63 = vpop.xlane.xlu1 %594  ;;  %v805_v0 = vpop.xlane.xlu0 %804  ;;  %v1553_v1 = vcombine.low %v1544_v54, %v1551_v55  ;;  %v956_v2 = vrot.slane %v830_v28, %v3079_v33  ;;  %v1471_v3 = vcombine.low %v928_v44, %v932_v50  ;;  %v1472_v4 = vcombine.low %v936_v56, %v940_v57 }
 0x182   : > { %2158 = vperm.xlu1 %2752, %v1421_v59   ;;  %v832_v5 = vadd.f32 %v805_v0, %v591_v16  ;;  %v1560_v6 = vrot.slane %v1552_v60, %v3082_v35  ;;  %v1473_v7 = vcombine.low %v944_v58, %v948_v61  ;;  %v1024_v8 = vrot.slane %v833_v51, %v3058_v24 }
 0x183   : > { %v1567_v9 = vrot.slane %v1553_v1, %v3082_v35  ;;  %v1474_v10 = vcombine.low %v952_v62, %v956_v2  ;;  %v1481_v11 = vrot.slane %v1471_v3, %v3082_v35  ;;  %v1488_v12 = vrot.slane %v1472_v4, %v3082_v35 }
 0x184   : > { %v1495_v13 = vrot.slane %v1473_v7, %v3082_v35  ;;  %v1028_v14 = vrot.slane %v833_v51, %v3061_v25  ;;  %v1032_v15 = vrot.slane %v833_v51, %v3064_v26  ;;  %v1036_v16 = vrot.slane %v833_v51, %v3067_v27 }
 0x185   : > { %v1568_v17 = vcombine.low %v1560_v6, %v1567_v9  ;;  %v601_v18 = vpop.xlane.xlu1 %600  ;;  %v811_v20 = vpop.xlane.xlu0 %810  ;;  %v1502_v21 = vrot.slane %v1474_v10, %v3082_v35  ;;  %v1503_v23 = vcombine.low %v1481_v11, %v1488_v12  ;;  %v1040_v28 = vrot.slane %v833_v51, %v3070_v30 }
 0x186   : > { %v3143_v29 = vadd.f32 %v811_v20, %v597_v45  ;;  %v1044_v34 = vrot.slane %v833_v51, %v3073_v31  ;;  %v1048_v36 = vrot.slane %v833_v51, %v3076_v32  ;;  %v1052_v37 = vrot.slane %v833_v51, %v3079_v33 }
 0x187   : > { %2167 = vperm.xlu1 %2752, %v1568_v17   ;;  %v1504_v38 = vcombine.low %v1495_v13, %v1502_v21  ;;  %v1511_v39 = vrot.slane %v1503_v23, %v3082_v35  ;;  %v1618_v40 = vcombine.low %v1024_v8, %v1028_v14  ;;  %v1619_v41 = vcombine.low %v1032_v15, %v1036_v16 }
 0x188   : > { %v1620_v42 = vcombine.low %v1040_v28, %v1044_v34  ;;  %v1621_v43 = vcombine.low %v1048_v36, %v1052_v37  ;;  %v992_v44 = vrot.slane %v832_v5, %v3058_v24  ;;  %v996_v46 = vrot.slane %v832_v5, %v3061_v25 }
 0x189   : > { %v1518_v45 = vrot.slane %v1504_v38, %v3082_v35  ;;  %v599_v47 = vpop.xlane.xlu1 %598  ;;  %v809_v48 = vpop.xlane.xlu0 %808  ;;  %v1628_v49 = vrot.slane %v1618_v40, %v3082_v35  ;;  %v1635_v50 = vrot.slane %v1619_v41, %v3082_v35  ;;  %v1000_v51 = vrot.slane %v832_v5, %v3064_v26 }
 0x18a   : > { %v3155_v52 = vadd.f32 %v809_v48, %v595_v63  ;;  %v1642_v53 = vrot.slane %v1620_v42, %v3082_v35  ;;  %v1649_v54 = vrot.slane %v1621_v43, %v3082_v35  ;;  %v1004_v55 = vrot.slane %v832_v5, %v3067_v27 }
 0x18b   : > { %v1519_v56 = vcombine.low %v1511_v39, %v1518_v45  ;;  %v1650_v57 = vcombine.low %v1628_v49, %v1635_v50  ;;  %v1008_v58 = vrot.slane %v832_v5, %v3070_v30  ;;  %v1012_v59 = vrot.slane %v832_v5, %v3073_v31 }
 0x18c   : > { %v1651_v60 = vcombine.low %v1642_v53, %v1649_v54  ;;  %v1016_v61 = vrot.slane %v832_v5, %v3076_v32  ;;  %v1020_v62 = vrot.slane %v832_v5, %v3079_v33  ;;  %v1569_v0 = vcombine.low %v992_v44, %v996_v46 }
 0x18d   : > { %2164 = vperm.xlu1 %2752, %v1519_v56   ;;  %v1658_v63 = vrot.slane %v1650_v57, %v3082_v35  ;;  %v815_v1 = vpop.xlane.xlu0 %814  ;;  %v1570_v2 = vcombine.low %v1000_v51, %v1004_v55  ;;  %v1571_v3 = vcombine.low %v1008_v58, %v1012_v59  ;;  %v1088_v4 = vrot.slane %v3143_v29, %v3058_v24  ;;  %v605_v10 = vpop.xlane.xlu1 %604 }
 0x18e   : > { %v1665_v6 = vrot.slane %v1651_v60, %v3082_v35  ;;  %v3168_v7 = vadd.f32 %v815_v1, %v601_v18  ;;  %v1572_v8 = vcombine.low %v1016_v61, %v1020_v62  ;;  %v1579_v9 = vrot.slane %v1569_v0, %v3082_v35 }
 0x18f   : > { %v1586_v5 = vrot.slane %v1570_v2, %v3082_v35  ;;  %v1593_v11 = vrot.slane %v1571_v3, %v3082_v35  ;;  %v1092_v12 = vrot.slane %v3143_v29, %v3061_v25  ;;  %v1096_v13 = vrot.slane %v3143_v29, %v3064_v26 }
 0x190   : > { %v1666_v14 = vcombine.low %v1658_v63, %v1665_v6  ;;  %v1600_v15 = vrot.slane %v1572_v8, %v3082_v35  ;;  %v1100_v16 = vrot.slane %v3143_v29, %v3067_v27  ;;  %v1104_v17 = vrot.slane %v3143_v29, %v3070_v30 }
 0x191   : > { %v1601_v18 = vcombine.low %v1579_v9, %v1586_v5  ;;  %v813_v20 = vpop.xlane.xlu0 %812  ;;  %v1108_v21 = vrot.slane %v3143_v29, %v3073_v31  ;;  %v1112_v23 = vrot.slane %v3143_v29, %v3076_v32  ;;  %v1116_v28 = vrot.slane %v3143_v29, %v3079_v33  ;;  %v603_v45 = vpop.xlane.xlu1 %602 }
 0x192   : > { %2173 = vperm.xlu1 %2752, %v1666_v14   ;;  %v1602_v34 = vcombine.low %v1593_v11, %v1600_v15  ;;  %v3188_v36 = vadd.f32 %v813_v20, %v599_v47  ;;  %v1716_v37 = vcombine.low %v1088_v4, %v1092_v12  ;;  %v1717_v38 = vcombine.low %v1096_v13, %v1100_v16 }
 0x193   : > { %v1609_v39 = vrot.slane %v1601_v18, %v3082_v35  ;;  %v1718_v40 = vcombine.low %v1104_v17, %v1108_v21  ;;  %v1719_v41 = vcombine.low %v1112_v23, %v1116_v28  ;;  %v1056_v42 = vrot.slane %v3155_v52, %v3058_v24 }
 0x194   : > { %v1616_v43 = vrot.slane %v1602_v34, %v3082_v35  ;;  %v1726_v44 = vrot.slane %v1716_v37, %v3082_v35  ;;  %v1733_v46 = vrot.slane %v1717_v38, %v3082_v35  ;;  %v1060_v29 = vrot.slane %v3155_v52, %v3061_v25 }
 0x195   : > { %v1740_v47 = vrot.slane %v1718_v40, %v3082_v35  ;;  %v1747_v48 = vrot.slane %v1719_v41, %v3082_v35  ;;  %v819_v49 = vpop.xlane.xlu0 %818  ;;  %v1064_v50 = vrot.slane %v3155_v52, %v3064_v26  ;;  %v1068_v51 = vrot.slane %v3155_v52, %v3067_v27  ;;  %v609_v11 = vpop.xlane.xlu1 %608 }
 0x196   : > { %v1617_v53 = vcombine.low %v1609_v39, %v1616_v43  ;;  %v1748_v54 = vcombine.low %v1726_v44, %v1733_v46  ;;  %v3204_v55 = vadd.f32 %v819_v49, %v605_v10  ;;  %v1072_v56 = vrot.slane %v3155_v52, %v3070_v30 }
 0x197   : > { %v1749_v57 = vcombine.low %v1740_v47, %v1747_v48  ;;  %v1076_v58 = vrot.slane %v3155_v52, %v3073_v31  ;;  %v1080_v59 = vrot.slane %v3155_v52, %v3076_v32  ;;  %v1084_v60 = vrot.slane %v3155_v52, %v3079_v33 }
 0x198   : > { %2170 = vperm.xlu0 %2751, %v1617_v53   ;;  %v1756_v61 = vrot.slane %v1748_v54, %v3082_v35  ;;  %v1667_v62 = vcombine.low %v1056_v42, %v1060_v29  ;;  %v1668_v0 = vcombine.low %v1064_v50, %v1068_v51  ;;  %v1152_v63 = vrot.slane %v3168_v7, %v3058_v24 }
 0x199   : > { %v1763_v1 = vrot.slane %v1749_v57, %v3082_v35  ;;  %v1669_v2 = vcombine.low %v1072_v56, %v1076_v58  ;;  %v1670_v3 = vcombine.low %v1080_v59, %v1084_v60  ;;  %v817_v4 = vpop.xlane.xlu0 %816  ;;  %v1156_v6 = vrot.slane %v3168_v7, %v3061_v25  ;;  %v607_v48 = vpop.xlane.xlu1 %606 }
 0x19a   : > { %v1677_v8 = vrot.slane %v1667_v62, %v3082_v35  ;;  %v1684_v52 = vrot.slane %v1668_v0, %v3082_v35  ;;  %v3222_v9 = vadd.f32 %v817_v4, %v603_v45  ;;  %v1160_v10 = vrot.slane %v3168_v7, %v3064_v26 }
 0x19b   : > { %v1764_v5 = vcombine.low %v1756_v61, %v1763_v1  ;;  %v1691_v12 = vrot.slane %v1669_v2, %v3082_v35  ;;  %v1698_v13 = vrot.slane %v1670_v3, %v3082_v35  ;;  %v1164_v14 = vrot.slane %v3168_v7, %v3067_v27 }
 0x19c   : > { %v1699_v15 = vcombine.low %v1677_v8, %v1684_v52  ;;  %v1168_v16 = vrot.slane %v3168_v7, %v3070_v30  ;;  %v1172_v17 = vrot.slane %v3168_v7, %v3073_v31  ;;  %v1176_v18 = vrot.slane %v3168_v7, %v3076_v32 }
 0x19d   : > { %2179 = vperm.xlu1 %2752, %v1764_v5   ;;  %v1700_v20 = vcombine.low %v1691_v12, %v1698_v13  ;;  %v1180_v21 = vrot.slane %v3168_v7, %v3079_v33  ;;  %v1814_v23 = vcombine.low %v1152_v63, %v1156_v6  ;;  %v1815_v28 = vcombine.low %v1160_v10, %v1164_v14  ;;  %v823_v34 = vpop.xlane.xlu0 %822  ;;  %v611_v13 = vpop.xlane.xlu1 %610 }
 0x19e   : > { %v1707_v37 = vrot.slane %v1699_v15, %v3082_v35  ;;  %v1816_v38 = vcombine.low %v1168_v16, %v1172_v17  ;;  %v3239_v39 = vadd.f32 %v823_v34, %v609_v11  ;;  %v1120_v40 = vrot.slane %v3188_v36, %v3058_v24 }
 0x19f   : > { %v1714_v41 = vrot.slane %v1700_v20, %v3082_v35  ;;  %v1817_v42 = vcombine.low %v1176_v18, %v1180_v21  ;;  %v1824_v43 = vrot.slane %v1814_v23, %v3082_v35  ;;  %v1831_v44 = vrot.slane %v1815_v28, %v3082_v35 }
 0x1a0   : > { %v1838_v7 = vrot.slane %v1816_v38, %v3082_v35  ;;  %v1124_v46 = vrot.slane %v3188_v36, %v3061_v25  ;;  %v1128_v29 = vrot.slane %v3188_v36, %v3064_v26  ;;  %v1132_v45 = vrot.slane %v3188_v36, %v3067_v27 }
 0x1a1   : > { %v1715_v47 = vcombine.low %v1707_v37, %v1714_v41  ;;  %v1845_v49 = vrot.slane %v1817_v42, %v3082_v35  ;;  %v1846_v50 = vcombine.low %v1824_v43, %v1831_v44  ;;  %v1136_v51 = vrot.slane %v3188_v36, %v3070_v30  ;;  %v821_v53 = vpop.xlane.xlu0 %820 }
 0x1a2   : > { %v1140_v54 = vrot.slane %v3188_v36, %v3073_v31  ;;  %v1144_v56 = vrot.slane %v3188_v36, %v3076_v32  ;;  %v1148_v57 = vrot.slane %v3188_v36, %v3079_v33  ;;  %v1765_v58 = vcombine.low %v1120_v40, %v1124_v46 }
 0x1a3   : > { %2176 = vperm.xlu0 %2751, %v1715_v47   ;;  %v1847_v59 = vcombine.low %v1838_v7, %v1845_v49  ;;  %v1854_v60 = vrot.slane %v1846_v50, %v3082_v35  ;;  %v1766_v61 = vcombine.low %v1128_v29, %v1132_v45  ;;  %v3263_v62 = vadd.f32 %v821_v53, %v607_v48  ;;  %v613_v49 = vpop.xlane.xlu1 %612 }
 0x1a4   : > { %v1767_v0 = vcombine.low %v1136_v51, %v1140_v54  ;;  %v1768_v63 = vcombine.low %v1144_v56, %v1148_v57  ;;  %v1775_v1 = vrot.slane %v1765_v58, %v3082_v35  ;;  %v1216_v2 = vrot.slane %v3204_v55, %v3058_v24 }
 0x1a5   : > { %v1861_v3 = vrot.slane %v1847_v59, %v3082_v35  ;;  %v1782_v4 = vrot.slane %v1766_v61, %v3082_v35  ;;  %v1220_v36 = vrot.slane %v3204_v55, %v3061_v25  ;;  %v1224_v6 = vrot.slane %v3204_v55, %v3064_v26  ;;  %v825_v8 = vpop.xlane.xlu0 %824 }
 0x1a6   : > { %v1789_v52 = vrot.slane %v1767_v0, %v3082_v35  ;;  %v1796_v10 = vrot.slane %v1768_v63, %v3082_v35  ;;  %v1228_v5 = vrot.slane %v3204_v55, %v3067_v27  ;;  %v1232_v11 = vrot.slane %v3204_v55, %v3070_v30 }
 0x1a7   : > { %v1862_v12 = vcombine.low %v1854_v60, %v1861_v3  ;;  %v1797_v14 = vcombine.low %v1775_v1, %v1782_v4  ;;  %v1236_v15 = vrot.slane %v3204_v55, %v3073_v31  ;;  %v1240_v16 = vrot.slane %v3204_v55, %v3076_v32 }
 0x1a8   : > { %v1798_v17 = vcombine.low %v1789_v52, %v1796_v10  ;;  %v1244_v18 = vrot.slane %v3204_v55, %v3079_v33  ;;  %v1912_v20 = vcombine.low %v1216_v2, %v1220_v36  ;;  %v1913_v21 = vcombine.low %v1224_v6, %v1228_v5 }
 0x1a9   : > { %2185 = vperm.xlu1 %2752, %v1862_v12   ;;  %v1805_v23 = vrot.slane %v1797_v14, %v3082_v35  ;;  %v1914_v28 = vcombine.low %v1232_v11, %v1236_v15  ;;  %v3287_v34 = vadd.f32 %v825_v8, %v611_v13  ;;  %v1184_v37 = vrot.slane %v3222_v9, %v3058_v24  ;;  %v827_v46 = vpop.xlane.xlu0 %826 }
 0x1aa   : > { %v1812_v38 = vrot.slane %v1798_v17, %v3082_v35  ;;  %v1915_v40 = vcombine.low %v1240_v16, %v1244_v18  ;;  %v1922_v41 = vrot.slane %v1912_v20, %v3082_v35  ;;  %v1929_v42 = vrot.slane %v1913_v21, %v3082_v35 }
 0x1ab   : > { %v1936_v55 = vrot.slane %v1914_v28, %v3082_v35  ;;  %v1188_v43 = vrot.slane %v3222_v9, %v3061_v25  ;;  %v1192_v44 = vrot.slane %v3222_v9, %v3064_v26  ;;  %v1196_v7 = vrot.slane %v3222_v9, %v3067_v27 }
 0x1ac   : > { %v1813_v29 = vcombine.low %v1805_v23, %v1812_v38  ;;  %v1943_v45 = vrot.slane %v1915_v40, %v3082_v35  ;;  %v1944_v47 = vcombine.low %v1922_v41, %v1929_v42  ;;  %v1200_v48 = vrot.slane %v3222_v9, %v3070_v30 }
 0x1ad   : > { %v1204_v50 = vrot.slane %v3222_v9, %v3073_v31  ;;  %v1208_v51 = vrot.slane %v3222_v9, %v3076_v32  ;;  %v1212_v53 = vrot.slane %v3222_v9, %v3079_v33  ;;  %v1863_v54 = vcombine.low %v1184_v37, %v1188_v43 }
 0x1ae   : > { %2182 = vperm.xlu0 %2751, %v1813_v29   ;;  %v1945_v56 = vcombine.low %v1936_v55, %v1943_v45  ;;  %v1952_v57 = vrot.slane %v1944_v47, %v3082_v35  ;;  %v1864_v58 = vcombine.low %v1192_v44, %v1196_v7  ;;  %v3311_v59 = vadd.f32 %v827_v46, %v613_v49 }
 0x1af   : > { %v1865_v60 = vcombine.low %v1200_v48, %v1204_v50  ;;  %v1866_v61 = vcombine.low %v1208_v51, %v1212_v53  ;;  %v1873_v0 = vrot.slane %v1863_v54, %v3082_v35  ;;  %v1280_v63 = vrot.slane %v3239_v39, %v3058_v24 }
 0x1b0   : > { %v1959_v1 = vrot.slane %v1945_v56, %v3082_v35  ;;  %v1880_v2 = vrot.slane %v1864_v58, %v3082_v35  ;;  %v1284_v9 = vrot.slane %v3239_v39, %v3061_v25  ;;  %v1288_v3 = vrot.slane %v3239_v39, %v3064_v26 }
 0x1b1   : > { %v1887_v4 = vrot.slane %v1865_v60, %v3082_v35  ;;  %v1894_v36 = vrot.slane %v1866_v61, %v3082_v35  ;;  %v1292_v6 = vrot.slane %v3239_v39, %v3067_v27  ;;  %v1296_v8 = vrot.slane %v3239_v39, %v3070_v30 }
 0x1b2   : > { %v1960_v52 = vcombine.low %v1952_v57, %v1959_v1  ;;  %v1895_v10 = vcombine.low %v1873_v0, %v1880_v2  ;;  %v1300_v5 = vrot.slane %v3239_v39, %v3073_v31  ;;  %v1304_v11 = vrot.slane %v3239_v39, %v3076_v32 }
 0x1b3   : > { %v1896_v12 = vcombine.low %v1887_v4, %v1894_v36  ;;  %v1308_v13 = vrot.slane %v3239_v39, %v3079_v33  ;;  %v2010_v14 = vcombine.low %v1280_v63, %v1284_v9  ;;  %v2011_v15 = vcombine.low %v1288_v3, %v1292_v6 }
 0x1b4   : > { %2191 = vperm.xlu1 %2752, %v1960_v52   ;;  %v1903_v16 = vrot.slane %v1895_v10, %v3082_v35  ;;  %v2012_v17 = vcombine.low %v1296_v8, %v1300_v5  ;;  %v1248_v18 = vrot.slane %v3263_v62, %v3058_v24  ;;  %v1252_v20 = vrot.slane %v3263_v62, %v3061_v25 }
 0x1b5   : > { %v1910_v21 = vrot.slane %v1896_v12, %v3082_v35  ;;  %v2013_v23 = vcombine.low %v1304_v11, %v1308_v13  ;;  %v2020_v28 = vrot.slane %v2010_v14, %v3082_v35  ;;  %v2027_v37 = vrot.slane %v2011_v15, %v3082_v35 }
 0x1b6   : > { %v2034_v39 = vrot.slane %v2012_v17, %v3082_v35  ;;  %v1256_v38 = vrot.slane %v3263_v62, %v3064_v26  ;;  %v1260_v40 = vrot.slane %v3263_v62, %v3067_v27  ;;  %v1264_v41 = vrot.slane %v3263_v62, %v3070_v30 }
 0x1b7   : > { %v1911_v42 = vcombine.low %v1903_v16, %v1910_v21  ;;  %v2041_v55 = vrot.slane %v2013_v23, %v3082_v35  ;;  %v2042_v43 = vcombine.low %v2020_v28, %v2027_v37  ;;  %v1268_v44 = vrot.slane %v3263_v62, %v3073_v31 }
 0x1b8   : > { %v1272_v7 = vrot.slane %v3263_v62, %v3076_v32  ;;  %v1276_v46 = vrot.slane %v3263_v62, %v3079_v33  ;;  %v1961_v29 = vcombine.low %v1248_v18, %v1252_v20  ;;  %v1962_v45 = vcombine.low %v1256_v38, %v1260_v40 }
 0x1b9   : > { %2188 = vperm.xlu0 %2751, %v1911_v42   ;;  %v2043_v47 = vcombine.low %v2034_v39, %v2041_v55  ;;  %v2050_v48 = vrot.slane %v2042_v43, %v3082_v35  ;;  %v1963_v49 = vcombine.low %v1264_v41, %v1268_v44  ;;  %v1312_v50 = vrot.slane %v3287_v34, %v3058_v24 }
 0x1ba   : > { %v1964_v51 = vcombine.low %v1272_v7, %v1276_v46  ;;  %v1971_v53 = vrot.slane %v1961_v29, %v3082_v35  ;;  %v1978_v54 = vrot.slane %v1962_v45, %v3082_v35  ;;  %v1316_v56 = vrot.slane %v3287_v34, %v3061_v25  ;;  %v2353_v7 = vld [vmem:[%s3544_s3 + $0x78] sm:$0xff]  ;;  %v2352_v29 = vld [vmem:[%s3544_s3 + $0x70] sm:$0xff]  ;;  %v2351_v45 = vld [vmem:[%s3544_s3 + $0x68] sm:$0xff] }
 0x1bb   : > { %v2057_v62 = vrot.slane %v2043_v47, %v3082_v35  ;;  %v1985_v57 = vrot.slane %v1963_v49, %v3082_v35  ;;  %v1320_v58 = vrot.slane %v3287_v34, %v3064_v26  ;;  %v1324_v60 = vrot.slane %v3287_v34, %v3067_v27  ;;  %v2350_v47 = vld [vmem:[%s3544_s3 + $0x60] sm:$0xff]  ;;  %v2348_v49 = vld [vmem:[%s3544_s3 + $0x50] sm:$0xff] }
 0x1bc   : > { %v1992_v61 = vrot.slane %v1964_v51, %v3082_v35  ;;  %v1993_v0 = vcombine.low %v1971_v53, %v1978_v54  ;;  %v1328_v63 = vrot.slane %v3287_v34, %v3070_v30  ;;  %v1332_v1 = vrot.slane %v3287_v34, %v3073_v31  ;;  %v2346_v51 = vld [vmem:[%s3544_s3 + $0x40] sm:$0xff]  ;;  %v2345_v53 = vld [vmem:[%s3544_s3 + $0x38] sm:$0xff]  ;;  %v2344_v54 = vld [vmem:[%s3544_s3 + $0x30] sm:$0xff] }
 0x1bd   : > { %v2058_v2 = vcombine.low %v2050_v48, %v2057_v62  ;;  %v1336_v9 = vrot.slane %v3287_v34, %v3076_v32  ;;  %v1340_v3 = vrot.slane %v3287_v34, %v3079_v33  ;;  %v2059_v4 = vcombine.low %v1312_v50, %v1316_v56  ;;  %v2349_v48 = vld [vmem:[%s3544_s3 + $0x58] sm:$0xff]  ;;  %v2347_v50 = vld [vmem:[%s3544_s3 + $0x48] sm:$0xff]  ;;  %v2342_v62 = vld [vmem:[%s3544_s3 + $0x20] sm:$0xff] }
 0x1be   : > { %v1994_v36 = vcombine.low %v1985_v57, %v1992_v61  ;;  %v2001_v6 = vrot.slane %v1993_v0, %v3082_v35  ;;  %v2060_v8 = vcombine.low %v1320_v58, %v1324_v60  ;;  %v2061_v52 = vcombine.low %v1328_v63, %v1332_v1  ;;  %v2343_v56 = vld [vmem:[%s3544_s3 + $0x28] sm:$0xff]  ;;  %v2341_v57 = vld [vmem:[%s3544_s3 + $0x18] sm:$0xff]  ;;  %v2340_v58 = vld [vmem:[%s3544_s3 + $0x10] sm:$0xff] }
 0x1bf   : > { %2197 = vperm.xlu1 %2752, %v2058_v2   ;;  %v2062_v10 = vcombine.low %v1336_v9, %v1340_v3  ;;  %v2069_v5 = vrot.slane %v2059_v4, %v3082_v35  ;;  %v1344_v11 = vrot.slane %v3311_v59, %v3058_v24  ;;  %v1348_v12 = vrot.slane %v3311_v59, %v3061_v25  ;;  %v2339_v60 = vld [vmem:[%s3544_s3 + $0x8] sm:$0xff]  ;;  %v2338_v61 = vld [vmem:[%s3544_s3] sm:$0xff] }
 0x1c0   : > { %v2008_v13 = vrot.slane %v1994_v36, %v3082_v35  ;;  %v2076_v34 = vrot.slane %v2060_v8, %v3082_v35  ;;  %v2083_v14 = vrot.slane %v2061_v52, %v3082_v35  ;;  %v1352_v15 = vrot.slane %v3311_v59, %v3064_v26 }
 0x1c1   : > { %v2090_v16 = vrot.slane %v2062_v10, %v3082_v35  ;;  %v1356_v17 = vrot.slane %v3311_v59, %v3067_v27  ;;  %v1360_v24 = vrot.slane %v3311_v59, %v3070_v30  ;;  %v1364_v25 = vrot.slane %v3311_v59, %v3073_v31 }
 0x1c2   : > { %v2009_v18 = vcombine.low %v2001_v6, %v2008_v13  ;;  %v2091_v20 = vcombine.low %v2069_v5, %v2076_v34  ;;  %v1368_v21 = vrot.slane %v3311_v59, %v3076_v32  ;;  %v1372_v23 = vrot.slane %v3311_v59, %v3079_v33 }
 0x1c3   : > { %v2092_v26 = vcombine.low %v2083_v14, %v2090_v16  ;;  %v2108_v28 = vcombine.low %v1344_v11, %v1348_v12  ;;  %v2109_v37 = vcombine.low %v1352_v15, %v1356_v17  ;;  %v2110_v39 = vcombine.low %v1360_v24, %v1364_v25 }
 0x1c4   : > { %2194 = vperm.xlu0 %2751, %v2009_v18   ;;  %v2099_v27 = vrot.slane %v2091_v20, %v3082_v35  ;;  %v2111_v38 = vcombine.low %v1368_v21, %v1372_v23  ;;  %v2833_v46 = vmov 0.0   ;;  %v3457_v63 = vand.u32 127, %v861_v19 }
 0x1c5   : > { %v2106_v30 = vrot.slane %v2092_v26, %v3082_v35  ;;  %v2118_v31 = vrot.slane %v2108_v28, %v3082_v35  ;;  %v2125_v40 = vrot.slane %v2109_v37, %v3082_v35  ;;  %v2132_v41 = vrot.slane %v2110_v39, %v3082_v35  ;;  %2657 = vmatprep.subr.mxu0 %v2833_v46 }
 0x1c6   : > { %v2139_v32 = vrot.slane %v2111_v38, %v3082_v35  ;;  %254 = vst [vmem:[#allocation2] sm:$0x1] %v2833_v46  ;;  %2658 = vmatpush3.msra.mxu0 %v2353_v7  ;;  %2689 = vmatprep.mubr.msk.f32.mxu0 %vm2834_vm2, %v2833_v46  ;;  %v2218_v2 = vadd.s32 4294967280, %v3457_v63  ;;  %v2211_v9 = vadd.s32 4294967288, %v3457_v63  ;;  %v2209_v3 = vsub.s32 %v3457_v63, %v3055_v22 }
 0x1c7   : > { %v2107_v42 = vcombine.low %v2099_v27, %v2106_v30  ;;  %v2140_v33 = vcombine.low %v2118_v31, %v2125_v40  ;;  %2659 = vmatprep.subr.mxu0 %v2833_v46  ;;  %v2232_v6 = vadd.s32 4294967264, %v3457_v63  ;;  %v2225_v52 = vadd.s32 4294967272, %v3457_v63 }
 0x1c8   : > { %v2141_v59 = vcombine.low %v2132_v41, %v2139_v32  ;;  %2660 = vmatpush3.msra.mxu0 %v2352_v29  ;;  %v2221_v36 = vsub.s32 %v2218_v2, %v3055_v22  ;;  %v2214_v8 = vsub.s32 %v2211_v9, %v3055_v22  ;;  %v2246_v13 = vadd.s32 4294967248, %v3457_v63 }
 0x1c9   : > { %2200 = vperm.xlu0 %2751, %v2107_v42   ;;  %v2148_v55 = vrot.slane %v2140_v33, %v3082_v35  ;;  %2661 = vmatprep.subr.mxu0 %v2833_v46  ;;  %v2235_v11 = vsub.s32 %v2232_v6, %v3055_v22  ;;  %v2228_v14 = vsub.s32 %v2225_v52, %v3055_v22  ;;  %v2239_v15 = vadd.s32 4294967256, %v3457_v63 }
 0x1ca   : > { %v2155_v43 = vrot.slane %v2141_v59, %v3082_v35  ;;  %2662 = vmatpush3.msra.mxu0 %v2351_v45  ;;  %v2249_v25 = vsub.s32 %v2246_v13, %v3055_v22  ;;  %v2260_v20 = vadd.s32 4294967232, %v3457_v63  ;;  %v2253_v26 = vadd.s32 4294967240, %v3457_v63 }
 0x1cb   : > { %2663 = vmatprep.subr.mxu0 %v2833_v46  ;;  %v2242_v23 = vsub.s32 %v2239_v15, %v3055_v22  ;;  %v2274_v31 = vadd.s32 4294967216, %v3457_v63  ;;  %v2267_v32 = vadd.s32 4294967224, %v3457_v63  ;;  %v2288_v7 = vadd.s32 4294967200, %v3457_v63 }
 0x1cc   : > { %v2156_v44 = vcombine.low %v2148_v55, %v2155_v43  ;;  %2664 = vmatpush3.msra.mxu0 %v2350_v47  ;;  %v2263_v38 = vsub.s32 %v2260_v20, %v3055_v22  ;;  %v2256_v41 = vsub.s32 %v2253_v26, %v3055_v22  ;;  %v2281_v45 = vadd.s32 4294967208, %v3457_v63 }
 0x1cd   : > { %2665 = vmatprep.subr.mxu0 %v2833_v46  ;;  %v2277_v43 = vsub.s32 %v2274_v31, %v3055_v22  ;;  %v2270_v29 = vsub.s32 %v2267_v32, %v3055_v22 }
 0x1ce   : > { %2203 = vperm.xlu1 %2752, %v2156_v44   ;;  %2666 = vmatpush3.msra.mxu0 %v2349_v48 }
 0x1cf   : > { %2667 = vmatprep.subr.mxu0 %v2833_v46 }
 0x1d0   : > { %2668 = vmatpush3.msra.mxu0 %v2348_v49 }
 0x1d1   : > { %2669 = vmatprep.subr.mxu0 %v2833_v46 }
 0x1d2   : > { %2670 = vmatpush3.msra.mxu0 %v2347_v50 }
 0x1d3   : > { %2671 = vmatprep.subr.mxu0 %v2833_v46 }
 0x1d4   : > { %2672 = vmatpush3.msra.mxu0 %v2346_v51  ;;  %v2291_v51 = vsub.s32 %v2288_v7, %v3055_v22 }
 0x1d5   : > { %2673 = vmatprep.subr.mxu0 %v2833_v46 }
 0x1d6   : > { %2674 = vmatpush3.msra.mxu0 %v2345_v53 }
 0x1d7   : > { %2675 = vmatprep.subr.mxu0 %v2833_v46 }
 0x1d8   : > { %2676 = vmatpush3.msra.mxu0 %v2344_v54  ;;  %v2302_v54 = vadd.s32 4294967184, %v3457_v63 }
 0x1d9   : > { %2677 = vmatprep.subr.mxu0 %v2833_v46 }
 0x1da   : > { %2678 = vmatpush3.msra.mxu0 %v2343_v56  ;;  %v2305_v2 = vsub.s32 %v2302_v54, %v3055_v22 }
 0x1db   : > { %2679 = vmatprep.subr.mxu0 %v2833_v46 }
 0x1dc   : > { %2680 = vmatpush3.msra.mxu0 %v2342_v62  ;;  %v2284_v62 = vsub.s32 %v2281_v45, %v3055_v22 }
 0x1dd   : > { %2681 = vmatprep.subr.mxu0 %v2833_v46 }
 0x1de   : > { %2682 = vmatpush3.msra.mxu0 %v2341_v57  ;;  %v2295_v57 = vadd.s32 4294967192, %v3457_v63 }
 0x1df   : > { %2683 = vmatprep.subr.mxu0 %v2833_v46 }
 0x1e0   : > { %2684 = vmatpush3.msra.mxu0 %v2340_v58 }
 0x1e1   : > { %2685 = vmatprep.subr.mxu0 %v2833_v46 }
 0x1e2   : > { %2686 = vmatpush3.msra.mxu0 %v2339_v60 }
 0x1e3   : > { %2687 = vmatprep.subr.mxu0 %v2833_v46 }
 0x1e4   : > { %2688 = vmatpush3.msra.mxu0 %v2338_v61  ;;  %v2309_v61 = vadd.s32 4294967176, %v3457_v63 }
 0x1f4   : > { %v2162_v4 = vpop.permute.xlu0 %2161 }
 0x1f5   : > { %v2215_v34 = vrot.slane %v2162_v4, %v2214_v8  ;;  %v2312_v8 = vsub.s32 %v2309_v61, %v3055_v22 }
 0x1fd   : > { %v2159_v0 = vpop.permute.xlu1 %2158 }
 0x1fe   : > { %v2210_v19 = vrot.slane %v2159_v0, %v2209_v3  ;;  %v2298_v3 = vsub.s32 %v2295_v57, %v3055_v22 }
 0x200   : > { %v2217_v16 = vsel %vm2216_vm3, %v2215_v34, %v2210_v19 }
 0x202   : > { %v2168_v1 = vpop.permute.xlu1 %2167 }
 0x203   : > { %v2229_v21 = vrot.slane %v2168_v1, %v2228_v14  ;;  %v844_v14 = vld [vmem:[#allocation2] sm:$0x1] }
 0x208   : > { %v2165_v10 = vpop.permute.xlu1 %2164 }
 0x209   : > { %v2222_v5 = vrot.slane %v2165_v10, %v2221_v36 }
 0x20b   : > { %v2224_v17 = vsel %vm2223_vm4, %v2222_v5, %v2217_v16 }
 0x20c   : > { %v2231_v37 = vsel %vm2230_vm5, %v2229_v21, %v2224_v17 }
 0x20d   : > { %v2174_v28 = vpop.permute.xlu1 %2173 }
 0x20e   : > { %v2243_v40 = vrot.slane %v2174_v28, %v2242_v23 }
 0x213   : > { %v2171_v12 = vpop.permute.xlu0 %2170 }
 0x214   : > { %v2236_v24 = vrot.slane %v2171_v12, %v2235_v11 }
 0x216   : > { %v2238_v39 = vsel %vm2237_vm6, %v2236_v24, %v2231_v37  ;;  %v2354_v24 = vld [vmem:[%s3545_s4] sm:$0x1] }
 0x217   : > { %v2245_v33 = vsel %vm2244_vm7, %v2243_v40, %v2238_v39 }
 0x218   : > { %v2180_v42 = vpop.permute.xlu1 %2179 }
 0x219   : > { %v2257_v46 = vrot.slane %v2180_v42, %v2256_v41 }
 0x21e   : > { %v2177_v18 = vpop.permute.xlu0 %2176 }
 0x21f   : > { %v2250_v27 = vrot.slane %v2177_v18, %v2249_v25 }
 0x221   : > { %v2252_v59 = vsel %vm2251_vm8, %v2250_v27, %v2245_v33 }
 0x222   : > { %v2259_v48 = vsel %vm2258_vm9, %v2257_v46, %v2252_v59 }
 0x224   : > { %v2186_v47 = vpop.permute.xlu1 %2185 }
 0x225   : > { %v2271_v56 = vrot.slane %v2186_v47, %v2270_v29 }
 0x229   : > { %v2183_v30 = vpop.permute.xlu0 %2182 }
 0x22a   : > { %v2264_v55 = vrot.slane %v2183_v30, %v2263_v38 }
 0x22c   : > { %v2266_v49 = vsel %vm2265_vm10, %v2264_v55, %v2259_v48 }
 0x22d   : > { %v2273_v60 = vsel %vm2272_vm11, %v2271_v56, %v2266_v49 }
 0x22f   : > { %v2192_v58 = vpop.permute.xlu1 %2191 }
 0x230   : > { %v2285_v9 = vrot.slane %v2192_v58, %v2284_v62 }
 0x234   : > { %v2189_v44 = vpop.permute.xlu0 %2188 }
 0x235   : > { %v2278_v50 = vrot.slane %v2189_v44, %v2277_v43 }
 0x237   : > { %v2280_v0 = vsel %vm2279_vm12, %v2278_v50, %v2273_v60 }
 0x238   : > { %v2287_v6 = vsel %vm2286_vm13, %v2285_v9, %v2280_v0 }
 0x23a   : > { %v2198_v36 = vpop.permute.xlu1 %2197 }
 0x23b   : > { %v2299_v19 = vrot.slane %v2198_v36, %v2298_v3 }
 0x23f   : > { %v2195_v53 = vpop.permute.xlu0 %2194 }
 0x240   : > { %v2292_v1 = vrot.slane %v2195_v53, %v2291_v51 }
 0x242   : > { %v2294_v52 = vsel %vm2293_vm14, %v2292_v1, %v2287_v6 }
 0x243   : > { %v2301_v5 = vsel %vm2300_vm15, %v2299_v19, %v2294_v52 }
 0x244   : > { %v2201_v4 = vpop.permute.xlu0 %2200 }
 0x245   : > { %v2306_v10 = vrot.slane %v2201_v4, %v2305_v2 }
 0x247   : > { %v2308_v12 = vsel %vm2307_vm0, %v2306_v10, %v2301_v5 }
 0x249   : > { %v2204_v63 = vpop.permute.xlu1 %2203 }
 0x24a   : > { %v2313_v11 = vrot.slane %v2204_v63, %v2312_v8 }
 0x24c   : > { %v2315_v13 = vsel %vm2314_vm1, %v2313_v11, %v2308_v12 }
 0x24d   : > { %v2322_v34 = vrot.slane %v2315_v13, %v3082_v35 }
 0x24f   : > { %v2329_v15 = vrot.slane %v2322_v34, %v3082_v35 }
 0x251   : > { %v2331_v16 = vadd.f32 %v2329_v15, %v844_v14 }
 0x253   : > { %2332 = vst [vmem:[#allocation2] sm:$0x1] %v2331_v16 }
 0x25a   : > { %v2336_v22 = vld [vmem:[#allocation2] sm:$0x1] }
 0x25b   : > { %v2337_v17 = vmul.f32 0.00390625, %v2336_v22 }
 0x25d   : > { %2690 = vmatmul.mubr.f32.vlgmr.msra.gmra.mxu0 %v2337_v17 }
 0x31d   : > { %v2421_v25 = vpop.f32.mrf.mxu0 }
 0x31e   : > { %v2422_v18 = vadd.f32 %v2421_v25, %v2354_v24 }
 0x31f   : > { %v2691_v35 = vpop.f32.mrf.mxu0 }
 0x320   : > { %2425 = vst [vmem:[%s239_s7] sm:$0x1] %v2422_v18 }
 0x321   : > { %2766 = shalt.err (!%p2763_p5)
}
 0x322   : > { %s2767_s16 = scalar_lea.hbm %s3501_s11, 16  ;;  %s2771_s25 = scalar_lea.hbm %s3546_s5, 32 }
 0x323   : > { %p2768_p6 = scmp.ne.s32.totalorder %s3501_s11, %s2767_s16  ;;  %p2772_p10 = scmp.lt.s32.totalorder %s3501_s11, %s3546_s5 }
 0x324   : > { %p2773_p11 = scmp.lt.s32.totalorder %s2771_s25, %s2767_s16 }
 0x325   : > { %p2769_p7 = pnand %p2768_p6, %p2906_p4 }
 0x326   : > { %p2774_p12 = por %p2773_p11, %p2772_p10 }
 0x327   : > { %p2770_p9 = pneg %p2769_p7 }
 0x329   : > { %p2775_p13 = pnand %p2774_p12, %p2770_p9 }
 0x32b   : > { %2778 = shalt.err (!%p2775_p13)
}
 0x32c   : > { %2692 = dma.vmem_to_hbm [thread:$0]  (%p2906_p4), %s2440_s8, 16, %s3501_s11, %s2427_s12  }
 0x32d PF: > { %p2698_p0 = scmp.ge.s32.totalorder %s2829_s23, 2  ;;  %s2451_s7 = sand.u32 1, %s2809_s18  }
 0x32e   : > { %s2452_s9 = scalar_lea.sflag [#allocation4], %s2451_s7 }
 0x32f   : > { %p2695_p1 = pnand %p2698_p0, %p2913_p8 }
 0x331   : > { %p2696_p2 = pneg %p2695_p1 }
 0x333   : > { %2804 = dma.done.wait (%p2696_p2), %s2452_s9, 16  }
 0x334   : > { %2806 = vsyncadd (%p2696_p2), %s2452_s9, 4294967280  ;;  %s18_s23 = sadd.s32 1, %s2829_s23   ;;  %s3549_s18 = smov %s2813_s19 }
 0x335   : > { %p15_p3 = scmp.ge.s32.totalorder %s18_s23, 4   ;;  %s3550_s19 = smov %s2817_s20 }
 0x336   : > { %s3551_s20 = smov %s2919_s6  ;;  %s3552_s21 = smov %s2825_s22 }
 0x337   : > { %s3553_s22 = smov %s3555_s26  ;;  %17 = sbr.rel (!%p15_p3) target bundleno = 4 (0x4), region = 84 }
 0x33c   :  { %2456 = vsyncpa [#allocation4], 1 }
 0x33d   :  { %2458 = vsyncpa [#allocation4 + $0x1], 1 }

</bundles_post_ra>
